<compile_context>
chip_gen: v7x
topology: tpu7x:2x2x1
jax: 0.10.0
libtpu: 0.0.40
codegen_flags: <defaults>
</compile_context>

<pallas_src>
import numpy as np

import jax
import jax.numpy as jnp
from jax.experimental import pallas as pl
from jax.experimental.pallas import tpu as pltpu


LN_EPS = 1e-5


# -----------------------------------------------------------------------------
# Pallas kernel: fused power-spectrum outer product + LayerNorm +
# species-routed MLP (one species per tile) + per-structure energy reduction
# -----------------------------------------------------------------------------
def bpps_kernel(tile_sid_ref,            # SMEM (n_tiles,) int32  [scalar prefetch]
                c_ref,                   # (TM, A)        f32  radial coefficients
                ohT_ref,                 # (B, TM)        f32  structure one-hot^T (0 on pad cols)
                ln_g_ref, ln_b_ref,      # (1, F_pad)     f32  (padded lanes = 0)
                w1_ref,                  # (1, F_pad, H1) bf16  species block (via index_map)
                w2_ref,                  # (1, H1, H2)    bf16
                wout_ref,                # (1, 1, H2)     f32  Wout^T pre-scaled by scale/norm
                baseline_ref,            # (B, 1)         f32  composition baseline
                out_ref):                # (B, 1)         f32  per-structure energies
    t = pl.program_id(0)

    @pl.when(t == 0)
    def _init():
        # eval-mode composition baseline doubles as the accumulator init
        out_ref[...] = baseline_ref[...]

    c = c_ref[...]                                    # (TM, A) f32
    tm, a = c.shape
    f_pad = w1_ref.shape[1]
    f_real = a * a

    # fused l=0 power spectrum: ps[i, x*A + y] = c[i, x] * c[i, y], zero-padded
    chunks = [c * c[:, x:x + 1] for x in range(a)]
    if f_pad > f_real:
        chunks.append(jnp.zeros((tm, f_pad - f_real), jnp.float32))
    ps = jnp.concatenate(chunks, axis=-1)             # (TM, F_pad)

    # LayerNorm stats computed algebraically from c (exact identity):
    #   sum_f ps = (sum_x c_x)^2 ,  sum_f ps^2 = (sum_x c_x^2)^2
    cs = jnp.sum(c, axis=-1, keepdims=True)           # (TM, 1)
    cs2 = jnp.sum(c * c, axis=-1, keepdims=True)      # (TM, 1)
    inv_f = 1.0 / f_real
    mean = (cs * cs) * inv_f
    ex2 = (cs2 * cs2) * inv_f
    var = ex2 - mean * mean
    inv = jax.lax.rsqrt(var + LN_EPS)
    xn = (ps - mean) * inv * ln_g_ref[...] + ln_b_ref[...]   # padded lanes -> 0

    # species-routed MLP: this tile holds a single species (LinearMap routing
    # is done by the species-grouped layout + weight index_map)
    h = jnp.dot(xn.astype(jnp.bfloat16), w1_ref[0],
                preferred_element_type=jnp.float32)
    h = h * jax.nn.sigmoid(h)                                # SiLU
    h = jnp.dot(h.astype(jnp.bfloat16), w2_ref[0],
                preferred_element_type=jnp.float32)
    h = h * jax.nn.sigmoid(h)                                # SiLU

    # per-structure segment sum on the MXU: (B, TM) @ (TM, H2) -> (B, H2)
    # (pad rows have an all-zero one-hot column, so they contribute nothing)
    p = jnp.dot(ohT_ref[...].astype(jnp.bfloat16), h.astype(jnp.bfloat16),
                preferred_element_type=jnp.float32)
    # output layer (out_features == 1): VPU multiply + lane reduction on (B, H2)
    out_ref[...] += jnp.sum(p * wout_ref[0], axis=-1, keepdims=True)   # (B, 1)


def bpps_forward_pallas(c_grouped, ohT_grouped, tile_species,
                        ln_gamma_pad, ln_beta_pad,
                        w1_bf16, w2_bf16, woutT_scaled, baseline, *, tile_m):
    n_pad, a = c_grouped.shape
    n_tiles = n_pad // tile_m
    b = ohT_grouped.shape[0]
    f_pad, h1 = w1_bf16.shape[1], w1_bf16.shape[2]
    h2 = w2_bf16.shape[2]

    grid_spec = pltpu.PrefetchScalarGridSpec(
        num_scalar_prefetch=1,
        grid=(n_tiles,),
        in_specs=[
            pl.BlockSpec((tile_m, a), lambda t, sid: (t, 0)),             # c
            pl.BlockSpec((b, tile_m), lambda t, sid: (0, t)),             # one-hot^T (lane-dense)
            pl.BlockSpec((1, f_pad), lambda t, sid: (0, 0)),              # gamma
            pl.BlockSpec((1, f_pad), lambda t, sid: (0, 0)),              # beta
            pl.BlockSpec((1, f_pad, h1), lambda t, sid: (sid[t], 0, 0)),  # W1[s]
            pl.BlockSpec((1, h1, h2), lambda t, sid: (sid[t], 0, 0)),     # W2[s]
            pl.BlockSpec((1, 1, h2), lambda t, sid: (sid[t], 0, 0)),      # Wout[s]^T (scaled)
            pl.BlockSpec((b, 1), lambda t, sid: (0, 0)),                  # baseline
        ],
        out_specs=pl.BlockSpec((b, 1), lambda t, sid: (0, 0)),            # resident accumulator
    )

    out = pl.pallas_call(
        bpps_kernel,
        out_shape=jax.ShapeDtypeStruct((b, 1), jnp.float32),
        grid_spec=grid_spec,
        compiler_params=pltpu.CompilerParams(
            dimension_semantics=("arbitrary",),      # atom-tile axis reduces into out
            vmem_limit_bytes=32 * 1024 * 1024,       # safe on v5e/v6e/v7x at these tiles
        ),
    )(tile_species, c_grouped, ohT_grouped, ln_gamma_pad, ln_beta_pad,
      w1_bf16, w2_bf16, woutT_scaled, baseline)
    return out                                        # (B, 1)


# -----------------------------------------------------------------------------
# Wrapper-side glue
# -----------------------------------------------------------------------------
def compute_radial_coeffs(positions, cells, numbers, edge_indices, edge_offsets,
                          batch, unique_numbers, cutoff, n_max):
    """Simplified l=0 radial expansion coefficients c (N, S*n_max). Plain-JAX
    glue: the edge gather/scatter is data-dependent and stays outside Pallas."""
    i_idx = edge_indices[0]
    j_idx = edge_indices[1]
    cell_per_edge = cells[batch[i_idx]]
    shift = jnp.einsum('ek,ekl->el',
                       edge_offsets.astype(positions.dtype), cell_per_edge)
    r_vec = positions[j_idx] + shift - positions[i_idx]
    d = jnp.sqrt(jnp.sum(r_vec * r_vec, axis=-1) + 1e-12)
    fc = 0.5 * (jnp.cos(jnp.pi * jnp.clip(d / cutoff, 0.0, 1.0)) + 1.0)
    mus = jnp.linspace(0.0, cutoff, n_max, dtype=positions.dtype)
    sigma = cutoff / n_max
    rbf = jnp.exp(-((d[:, None] - mus[None, :]) ** 2) / (2.0 * sigma ** 2))
    rbf = rbf * fc[:, None]
    un = jnp.asarray(unique_numbers)
    nb_onehot = (numbers[j_idx][:, None] == un[None, :]).astype(positions.dtype)
    contrib = nb_onehot[:, :, None] * rbf[:, None, :]            # (E, S, n_max)
    n_atoms = positions.shape[0]
    c = jax.ops.segment_sum(contrib, i_idx, num_segments=n_atoms)
    return c.reshape(n_atoms, -1)                                 # (N, S*n_max)


def group_atoms_by_species(numbers, batch, n_struct, unique_numbers, tile_m):
    """Sort atoms by center species and pad each group to a multiple of tile_m.
    Host-side (numpy) bookkeeping — like neighbor-list construction, it is
    data-dependent preprocessing outside the kernel.  Returns the transposed
    structure one-hot (B, N_pad) so per-tile blocks are lane-dense."""
    numbers_np = np.asarray(numbers)
    batch_np = np.asarray(batch)
    perm_chunks, tile_species = [], []
    for s, z in enumerate(unique_numbers):
        idx = np.nonzero(numbers_np == z)[0]
        if idx.size == 0:
            continue
        n_tiles_s = -(-idx.size // tile_m)
        padded = np.full(n_tiles_s * tile_m, -1, dtype=np.int64)
        padded[:idx.size] = idx
        perm_chunks.append(padded)
        tile_species.extend([s] * n_tiles_s)
    perm = np.concatenate(perm_chunks)
    valid = perm >= 0
    safe = np.where(valid, perm, 0)
    oh = np.zeros((perm.size, n_struct), dtype=np.float32)
    oh[np.arange(perm.size)[valid], batch_np[safe][valid]] = 1.0
    ohT = np.ascontiguousarray(oh.T)                              # (B, N_pad)
    return (jnp.asarray(safe, dtype=jnp.int32),
            jnp.asarray(valid.astype(np.float32)),
            jnp.asarray(ohT),
            jnp.asarray(np.asarray(tile_species, dtype=np.int32)))


# -----------------------------------------------------------------------------
# Pure-JAX f32 reference (mirrors the original eval-mode forward)
# -----------------------------------------------------------------------------
def bpps_reference(c, numbers, batch, n_struct, unique_numbers,
                   ln_gamma, ln_beta, w1, w2, wout, comp_w,
                   norm_factor, scale_factor):
    n, a = c.shape
    ps = (c[:, :, None] * c[:, None, :]).reshape(n, a * a)
    mean = jnp.mean(ps, axis=-1, keepdims=True)
    var = jnp.mean((ps - mean) ** 2, axis=-1, keepdims=True)
    xn = (ps - mean) * jax.lax.rsqrt(var + LN_EPS) * ln_gamma + ln_beta
    sp = (numbers[:, None] == jnp.asarray(unique_numbers)[None, :]).astype(jnp.float32)
    n_species = len(unique_numbers)
    h1 = jnp.zeros((n, w1.shape[2]), jnp.float32)
    for s in range(n_species):
        h1 += sp[:, s:s + 1] * (xn @ w1[s])
    h1 = h1 * jax.nn.sigmoid(h1)
    h2 = jnp.zeros((n, w2.shape[2]), jnp.float32)
    for s in range(n_species):
        h2 += sp[:, s:s + 1] * (h1 @ w2[s])
    h2 = h2 * jax.nn.sigmoid(h2)
    feat = jnp.zeros((n, wout.shape[2]), jnp.float32)
    for s in range(n_species):
        feat += sp[:, s:s + 1] * (h2 @ wout[s])
    energies = jnp.zeros((n_struct, 1), jnp.float32).at[batch].add(feat)
    energies = energies / norm_factor
    compositions = jnp.zeros((n_struct, n_species), jnp.float32).at[batch].add(sp)
    return energies * scale_factor + compositions @ comp_w.T


# -----------------------------------------------------------------------------
# Demo / driver
# -----------------------------------------------------------------------------
if __name__ == "__main__":
    key = jax.random.PRNGKey(0)

    # model config (small, consistent with BPPSModel.__init__)
    unique_numbers = [1, 8]                 # e.g. H, O
    n_species = len(unique_numbers)
    n_max = 4
    a_dim = n_species * n_max               # 8 radial/species channels
    feat_dim = a_dim * a_dim                # ps_input_size = 64
    feat_pad = 128                          # lane-dense feature width
    hidden_sizes = [128, 128]               # lane-dense hidden widths
    output_size = 1
    cutoff = 4.0
    tile_m = 128                            # atom tile (re-derive for v7x VMEM)

    # structures: 2 structures x 8 atoms each
    n_struct = 2
    atoms_per_struct = 8
    n_atoms = n_struct * atoms_per_struct

    k_pos, k_num, k_w1, k_w2, k_wo, k_cw = jax.random.split(key, 6)
    positions = jax.random.uniform(k_pos, (n_atoms, 3), jnp.float32, 0.0, 3.0)
    cells = jnp.tile(jnp.eye(3, dtype=jnp.float32)[None] * 10.0, (n_struct, 1, 1))
    numbers = jnp.asarray(unique_numbers)[
        jax.random.randint(k_num, (n_atoms,), 0, n_species)]
    batch = jnp.repeat(jnp.arange(n_struct), atoms_per_struct)

    # fully-connected intra-structure neighbor list (no PBC offsets)
    src, dst = [], []
    for b in range(n_struct):
        base = b * atoms_per_struct
        for i in range(atoms_per_struct):
            for j in range(atoms_per_struct):
                if i != j:
                    src.append(base + i)
                    dst.append(base + j)
    edge_indices = jnp.asarray([src, dst], dtype=jnp.int32)
    edge_offsets = jnp.zeros((edge_indices.shape[1], 3), jnp.float32)

    # parameters (per-species LinearMap weights, no bias)
    h1_dim, h2_dim = hidden_sizes
    w1 = 0.1 * jax.random.normal(k_w1, (n_species, feat_dim, h1_dim), jnp.float32)
    w2 = 0.1 * jax.random.normal(k_w2, (n_species, h1_dim, h2_dim), jnp.float32)
    wout = 0.1 * jax.random.normal(k_wo, (n_species, h2_dim, output_size), jnp.float32)
    ln_gamma = jnp.ones((1, feat_dim), jnp.float32)
    ln_beta = jnp.zeros((1, feat_dim), jnp.float32)
    composition_weights = 0.5 * jax.random.normal(
        k_cw, (output_size, n_species), jnp.float32)
    # NOTE: reference module stores a single global normalization_factor buffer.
    normalization_factor = jnp.float32(float(atoms_per_struct))
    energies_scale_factor = jnp.float32(2.0)

    # --- glue: simplified radial power-spectrum coefficients (plain JAX) -----
    c = compute_radial_coeffs(positions, cells, numbers, edge_indices,
                              edge_offsets, batch, unique_numbers, cutoff, n_max)

    # --- wrapper prep: species grouping, lane padding, bf16 casts ------------
    gather_idx, valid, ohT_grouped, tile_species = group_atoms_by_species(
        numbers, batch, n_struct, unique_numbers, tile_m)
    c_grouped = c[gather_idx] * valid[:, None]                   # (N_pad, A)

    ln_gamma_pad = jnp.zeros((1, feat_pad), jnp.float32).at[:, :feat_dim].set(ln_gamma)
    ln_beta_pad = jnp.zeros((1, feat_pad), jnp.float32).at[:, :feat_dim].set(ln_beta)
    w1_pad = jnp.zeros((n_species, feat_pad, h1_dim), jnp.float32).at[:, :feat_dim].set(w1)
    w1_bf16 = w1_pad.astype(jnp.bfloat16)
    w2_bf16 = w2.astype(jnp.bfloat16)
    # output layer stays f32 (VPU path); fold eval-mode scale / normalization in
    woutT_scaled = wout.transpose(0, 2, 1) * (energies_scale_factor
                                              / normalization_factor)  # (S, 1, H2)

    # composition baseline (batch-static metadata, computed in the wrapper)
    sp = (numbers[:, None] == jnp.asarray(unique_numbers)[None, :]).astype(jnp.float32)
    compositions = jnp.zeros((n_struct, n_species), jnp.float32).at[batch].add(sp)
    baseline = compositions @ composition_weights.T                     # (B, 1)

    energies = bpps_forward_pallas(c_grouped, ohT_grouped, tile_species,
                                   ln_gamma_pad, ln_beta_pad,
                                   w1_bf16, w2_bf16, woutT_scaled, baseline,
                                   tile_m=tile_m)
    energies = jax.block_until_ready(energies)
    assert energies.shape == (n_struct, 1)

    # correctness check vs. pure-JAX f32 reference (bf16 MXU -> loose tolerance)
    ref = bpps_reference(c, numbers, batch, n_struct, unique_numbers,
                         ln_gamma, ln_beta, w1, w2, wout, composition_weights,
                         normalization_factor, energies_scale_factor)
    np.testing.assert_allclose(np.asarray(energies), np.asarray(ref),
                               rtol=5e-2, atol=5e-2)
    print("KERNEL_OK")
</pallas_src>

<mosaic_0001>
module attributes {stable_mosaic.version = 11 : i64} {
  func.func @bpps_kernel(%arg0: i32, %arg1: memref<2xi32, #tpu.memory_space<smem>>, %arg2: memref<128x8xf32, #tpu.memory_space<vmem>>, %arg3: memref<2x128xf32, #tpu.memory_space<vmem>>, %arg4: memref<1x128xf32, #tpu.memory_space<vmem>>, %arg5: memref<1x128xf32, #tpu.memory_space<vmem>>, %arg6: memref<1x128x128xbf16, #tpu.memory_space<vmem>>, %arg7: memref<1x128x128xbf16, #tpu.memory_space<vmem>>, %arg8: memref<1x1x128xf32, #tpu.memory_space<vmem>>, %arg9: memref<2x1xf32, #tpu.memory_space<vmem>>, %arg10: memref<2x1xf32, #tpu.memory_space<vmem>>) attributes {dimension_semantics = [#tpu.dimension_semantics<arbitrary>], iteration_bounds = array<i64: 2>, scalar_prefetch = 1 : i64, scratch_operands = 0 : i64, tpu.core_type = #tpu.core_type<tc>, window_params = [{transform_indices = @transform_0, window_bounds = array<i64: 128, 8>}, {transform_indices = @transform_1, window_bounds = array<i64: 2, 128>}, {pipeline_mode = #tpu.pipeline_mode<synchronous>, transform_indices = @transform_2, window_bounds = array<i64: 1, 128>}, {pipeline_mode = #tpu.pipeline_mode<synchronous>, transform_indices = @transform_3, window_bounds = array<i64: 1, 128>}, {transform_indices = @transform_4, window_bounds = array<i64: 1, 128, 128>}, {transform_indices = @transform_5, window_bounds = array<i64: 1, 128, 128>}, {transform_indices = @transform_6, window_bounds = array<i64: 1, 1, 128>}, {pipeline_mode = #tpu.pipeline_mode<synchronous>, transform_indices = @transform_7, window_bounds = array<i64: 2, 1>}, {pipeline_mode = #tpu.pipeline_mode<synchronous>, transform_indices = @transform_8, window_bounds = array<i64: 2, 1>}]} {
    %c0_i32 = arith.constant 0 : i32
    %0 = arith.cmpi eq, %arg0, %c0_i32 : i32
    %1 = arith.extui %0 : i1 to i32
    %c0_i32_0 = arith.constant 0 : i32
    %2 = arith.cmpi ne, %1, %c0_i32_0 : i32
    scf.if %2 {
      %c0_32 = arith.constant 0 : index
      %c0_33 = arith.constant 0 : index
      %89 = vector.load %arg9[%c0_32, %c0_33] : memref<2x1xf32, #tpu.memory_space<vmem>>, vector<2x1xf32>
      %c0_34 = arith.constant 0 : index
      %c0_35 = arith.constant 0 : index
      %90 = vector.load %arg10[%c0_34, %c0_35] : memref<2x1xf32, #tpu.memory_space<vmem>>, vector<2x1xf32>
      tpu.vector_store %arg10[%c0_34, %c0_35], %89 {strides = array<i32>} : memref<2x1xf32, #tpu.memory_space<vmem>>, vector<2x1xf32>,
    } else {
    }
    %c0 = arith.constant 0 : index
    %c0_1 = arith.constant 0 : index
    %3 = vector.load %arg2[%c0, %c0_1] : memref<128x8xf32, #tpu.memory_space<vmem>>, vector<128x8xf32>
    %4 = vector.extract_strided_slice %3 {offsets = [0, 0], sizes = [128, 1], strides = [1, 1]} : vector<128x8xf32> to vector<128x1xf32>
    %5 = vector.broadcast %4 : vector<128x1xf32> to vector<128x8xf32>
    %6 = arith.mulf %3, %5 : vector<128x8xf32>
    %7 = vector.extract_strided_slice %3 {offsets = [0, 1], sizes = [128, 1], strides = [1, 1]} : vector<128x8xf32> to vector<128x1xf32>
    %8 = vector.broadcast %7 : vector<128x1xf32> to vector<128x8xf32>
    %9 = arith.mulf %3, %8 : vector<128x8xf32>
    %10 = vector.extract_strided_slice %3 {offsets = [0, 2], sizes = [128, 1], strides = [1, 1]} : vector<128x8xf32> to vector<128x1xf32>
    %11 = vector.broadcast %10 : vector<128x1xf32> to vector<128x8xf32>
    %12 = arith.mulf %3, %11 : vector<128x8xf32>
    %13 = vector.extract_strided_slice %3 {offsets = [0, 3], sizes = [128, 1], strides = [1, 1]} : vector<128x8xf32> to vector<128x1xf32>
    %14 = vector.broadcast %13 : vector<128x1xf32> to vector<128x8xf32>
    %15 = arith.mulf %3, %14 : vector<128x8xf32>
    %16 = vector.extract_strided_slice %3 {offsets = [0, 4], sizes = [128, 1], strides = [1, 1]} : vector<128x8xf32> to vector<128x1xf32>
    %17 = vector.broadcast %16 : vector<128x1xf32> to vector<128x8xf32>
    %18 = arith.mulf %3, %17 : vector<128x8xf32>
    %19 = vector.extract_strided_slice %3 {offsets = [0, 5], sizes = [128, 1], strides = [1, 1]} : vector<128x8xf32> to vector<128x1xf32>
    %20 = vector.broadcast %19 : vector<128x1xf32> to vector<128x8xf32>
    %21 = arith.mulf %3, %20 : vector<128x8xf32>
    %22 = vector.extract_strided_slice %3 {offsets = [0, 6], sizes = [128, 1], strides = [1, 1]} : vector<128x8xf32> to vector<128x1xf32>
    %23 = vector.broadcast %22 : vector<128x1xf32> to vector<128x8xf32>
    %24 = arith.mulf %3, %23 : vector<128x8xf32>
    %25 = vector.extract_strided_slice %3 {offsets = [0, 7], sizes = [128, 1], strides = [1, 1]} : vector<128x8xf32> to vector<128x1xf32>
    %26 = vector.broadcast %25 : vector<128x1xf32> to vector<128x8xf32>
    %27 = arith.mulf %3, %26 : vector<128x8xf32>
    %cst = arith.constant 0.000000e+00 : f32
    %28 = vector.broadcast %cst : f32 to vector<128x64xf32>
    %29 = tpu.concatenate %6, %9, %12, %15, %18, %21, %24, %27, %28 in 1 : vector<128x8xf32>, vector<128x8xf32>, vector<128x8xf32>, vector<128x8xf32>, vector<128x8xf32>, vector<128x8xf32>, vector<128x8xf32>, vector<128x8xf32>, vector<128x64xf32> -> vector<128x128xf32>
    %cst_2 = arith.constant dense<0.000000e+00> : vector<128xf32>
    %30 = vector.multi_reduction <add>, %3, %cst_2 [1] : vector<128x8xf32> to vector<128xf32>
    %31 = vector.shape_cast %30 : vector<128xf32> to vector<128x1xf32>
    %32 = arith.mulf %3, %3 : vector<128x8xf32>
    %cst_3 = arith.constant dense<0.000000e+00> : vector<128xf32>
    %33 = vector.multi_reduction <add>, %32, %cst_3 [1] : vector<128x8xf32> to vector<128xf32>
    %34 = vector.shape_cast %33 : vector<128xf32> to vector<128x1xf32>
    %35 = arith.mulf %31, %31 : vector<128x1xf32>
    %cst_4 = arith.constant 1.562500e-02 : f32
    %36 = vector.broadcast %cst_4 : f32 to vector<128x1xf32>
    %37 = arith.mulf %35, %36 : vector<128x1xf32>
    %38 = arith.mulf %34, %34 : vector<128x1xf32>
    %cst_5 = arith.constant 1.562500e-02 : f32
    %39 = vector.broadcast %cst_5 : f32 to vector<128x1xf32>
    %40 = arith.mulf %38, %39 : vector<128x1xf32>
    %41 = arith.mulf %37, %37 : vector<128x1xf32>
    %42 = arith.subf %40, %41 : vector<128x1xf32>
    %cst_6 = arith.constant 9.99999974E-6 : f32
    %43 = vector.broadcast %cst_6 : f32 to vector<128x1xf32>
    %44 = arith.addf %42, %43 : vector<128x1xf32>
    %45 = math.rsqrt %44 : vector<128x1xf32>
    %46 = vector.broadcast %37 : vector<128x1xf32> to vector<128x128xf32>
    %47 = arith.subf %29, %46 : vector<128x128xf32>
    %48 = vector.broadcast %45 : vector<128x1xf32> to vector<128x128xf32>
    %49 = arith.mulf %47, %48 : vector<128x128xf32>
    %c0_7 = arith.constant 0 : index
    %c0_8 = arith.constant 0 : index
    %50 = vector.load %arg4[%c0_7, %c0_8] : memref<1x128xf32, #tpu.memory_space<vmem>>, vector<1x128xf32>
    %51 = vector.broadcast %50 : vector<1x128xf32> to vector<128x128xf32>
    %52 = arith.mulf %49, %51 : vector<128x128xf32>
    %c0_9 = arith.constant 0 : index
    %c0_10 = arith.constant 0 : index
    %53 = vector.load %arg5[%c0_9, %c0_10] : memref<1x128xf32, #tpu.memory_space<vmem>>, vector<1x128xf32>
    %54 = vector.broadcast %53 : vector<1x128xf32> to vector<128x128xf32>
    %55 = arith.addf %52, %54 : vector<128x128xf32>
    %56 = arith.truncf %55 : vector<128x128xf32> to vector<128x128xbf16>
    %c0_11 = arith.constant 0 : index
    %c0_12 = arith.constant 0 : index
    %c0_13 = arith.constant 0 : index
    %57 = vector.load %arg6[%c0_11, %c0_12, %c0_13] : memref<1x128x128xbf16, #tpu.memory_space<vmem>>, vector<1x128x128xbf16>
    %58 = vector.shape_cast %57 : vector<1x128x128xbf16> to vector<128x128xbf16>
    %cst_14 = arith.constant dense<0.000000e+00> : vector<128x128xf32>
    %59 = tpu.matmul %56, %58, %cst_14 {dimension_numbers = #tpu.dot_dimension_numbers<[1], [0], [0], [1], [0, 0, 1, 1], [], []>} : vector<128x128xbf16>, vector<128x128xbf16>, vector<128x128xf32> -> vector<128x128xf32>
    %60 = arith.negf %59 : vector<128x128xf32>
    %61 = math.exp %60 : vector<128x128xf32>
    %cst_15 = arith.constant 1.000000e+00 : f32
    %62 = vector.broadcast %cst_15 : f32 to vector<128x128xf32>
    %63 = arith.addf %62, %61 : vector<128x128xf32>
    %64 = arith.divf %62, %63 : vector<128x128xf32>
    %65 = arith.mulf %59, %64 : vector<128x128xf32>
    %66 = arith.truncf %65 : vector<128x128xf32> to vector<128x128xbf16>
    %c0_16 = arith.constant 0 : index
    %c0_17 = arith.constant 0 : index
    %c0_18 = arith.constant 0 : index
    %67 = vector.load %arg7[%c0_16, %c0_17, %c0_18] : memref<1x128x128xbf16, #tpu.memory_space<vmem>>, vector<1x128x128xbf16>
    %68 = vector.shape_cast %67 : vector<1x128x128xbf16> to vector<128x128xbf16>
    %cst_19 = arith.constant dense<0.000000e+00> : vector<128x128xf32>
    %69 = tpu.matmul %66, %68, %cst_19 {dimension_numbers = #tpu.dot_dimension_numbers<[1], [0], [0], [1], [0, 0, 1, 1], [], []>} : vector<128x128xbf16>, vector<128x128xbf16>, vector<128x128xf32> -> vector<128x128xf32>
    %70 = arith.negf %69 : vector<128x128xf32>
    %71 = math.exp %70 : vector<128x128xf32>
    %cst_20 = arith.constant 1.000000e+00 : f32
    %72 = vector.broadcast %cst_20 : f32 to vector<128x128xf32>
    %73 = arith.addf %72, %71 : vector<128x128xf32>
    %74 = arith.divf %72, %73 : vector<128x128xf32>
    %75 = arith.mulf %69, %74 : vector<128x128xf32>
    %c0_21 = arith.constant 0 : index
    %c0_22 = arith.constant 0 : index
    %76 = vector.load %arg3[%c0_21, %c0_22] : memref<2x128xf32, #tpu.memory_space<vmem>>, vector<2x128xf32>
    %77 = arith.truncf %76 : vector<2x128xf32> to vector<2x128xbf16>
    %78 = arith.truncf %75 : vector<128x128xf32> to vector<128x128xbf16>
    %cst_23 = arith.constant dense<0.000000e+00> : vector<2x128xf32>
    %79 = tpu.matmul %77, %78, %cst_23 {dimension_numbers = #tpu.dot_dimension_numbers<[1], [0], [0], [1], [0, 0, 1, 1], [], []>} : vector<2x128xbf16>, vector<128x128xbf16>, vector<2x128xf32> -> vector<2x128xf32>
    %c0_24 = arith.constant 0 : index
    %c0_25 = arith.constant 0 : index
    %80 = vector.load %arg10[%c0_24, %c0_25] : memref<2x1xf32, #tpu.memory_space<vmem>>, vector<2x1xf32>
    %c0_26 = arith.constant 0 : index
    %c0_27 = arith.constant 0 : index
    %c0_28 = arith.constant 0 : index
    %81 = vector.load %arg8[%c0_26, %c0_27, %c0_28] : memref<1x1x128xf32, #tpu.memory_space<vmem>>, vector<1x1x128xf32>
    %82 = vector.shape_cast %81 : vector<1x1x128xf32> to vector<1x128xf32>
    %83 = vector.broadcast %82 : vector<1x128xf32> to vector<2x128xf32>
    %84 = arith.mulf %79, %83 : vector<2x128xf32>
    %cst_29 = arith.constant dense<0.000000e+00> : vector<2xf32>
    %85 = vector.multi_reduction <add>, %84, %cst_29 [1] : vector<2x128xf32> to vector<2xf32>
    %86 = vector.shape_cast %85 : vector<2xf32> to vector<2x1xf32>
    %87 = arith.addf %80, %86 : vector<2x1xf32>
    %c0_30 = arith.constant 0 : index
    %c0_31 = arith.constant 0 : index
    %88 = vector.load %arg10[%c0_30, %c0_31] : memref<2x1xf32, #tpu.memory_space<vmem>>, vector<2x1xf32>
    tpu.vector_store %arg10[%c0_30, %c0_31], %87 {strides = array<i32>} : memref<2x1xf32, #tpu.memory_space<vmem>>, vector<2x1xf32>,
    return
  }
  func.func @transform_0(%arg0: i32, %arg1: memref<2xi32, #tpu.memory_space<smem>>) -> (i32, i32) {
    %c0_i32 = arith.constant 0 : i32
    %c0_i32_0 = arith.constant 0 : i32
    return %arg0, %c0_i32 : i32, i32
  }
  func.func @transform_1(%arg0: i32, %arg1: memref<2xi32, #tpu.memory_space<smem>>) -> (i32, i32) {
    %c0_i32 = arith.constant 0 : i32
    %c0_i32_0 = arith.constant 0 : i32
    return %c0_i32, %arg0 : i32, i32
  }
  func.func @transform_2(%arg0: i32, %arg1: memref<2xi32, #tpu.memory_space<smem>>) -> (i32, i32) {
    %c0_i32 = arith.constant 0 : i32
    %c0_i32_0 = arith.constant 0 : i32
    %c0_i32_1 = arith.constant 0 : i32
    return %c0_i32, %c0_i32_0 : i32, i32
  }
  func.func @transform_3(%arg0: i32, %arg1: memref<2xi32, #tpu.memory_space<smem>>) -> (i32, i32) {
    %c0_i32 = arith.constant 0 : i32
    %c0_i32_0 = arith.constant 0 : i32
    %c0_i32_1 = arith.constant 0 : i32
    return %c0_i32, %c0_i32_0 : i32, i32
  }
  func.func @transform_4(%arg0: i32, %arg1: memref<2xi32, #tpu.memory_space<smem>>) -> (i32, i32, i32) {
    %0 = arith.index_cast %arg0 : i32 to index
    %1 = memref.load %arg1[%0] : memref<2xi32, #tpu.memory_space<smem>>
    %c0_i32 = arith.constant 0 : i32
    %c0_i32_0 = arith.constant 0 : i32
    %c0_i32_1 = arith.constant 0 : i32
    return %1, %c0_i32, %c0_i32_0 : i32, i32, i32
  }
  func.func @transform_5(%arg0: i32, %arg1: memref<2xi32, #tpu.memory_space<smem>>) -> (i32, i32, i32) {
    %0 = arith.index_cast %arg0 : i32 to index
    %1 = memref.load %arg1[%0] : memref<2xi32, #tpu.memory_space<smem>>
    %c0_i32 = arith.constant 0 : i32
    %c0_i32_0 = arith.constant 0 : i32
    %c0_i32_1 = arith.constant 0 : i32
    return %1, %c0_i32, %c0_i32_0 : i32, i32, i32
  }
  func.func @transform_6(%arg0: i32, %arg1: memref<2xi32, #tpu.memory_space<smem>>) -> (i32, i32, i32) {
    %0 = arith.index_cast %arg0 : i32 to index
    %1 = memref.load %arg1[%0] : memref<2xi32, #tpu.memory_space<smem>>
    %c0_i32 = arith.constant 0 : i32
    %c0_i32_0 = arith.constant 0 : i32
    %c0_i32_1 = arith.constant 0 : i32
    return %1, %c0_i32, %c0_i32_0 : i32, i32, i32
  }
  func.func @transform_7(%arg0: i32, %arg1: memref<2xi32, #tpu.memory_space<smem>>) -> (i32, i32) {
    %c0_i32 = arith.constant 0 : i32
    %c0_i32_0 = arith.constant 0 : i32
    %c0_i32_1 = arith.constant 0 : i32
    return %c0_i32, %c0_i32_0 : i32, i32
  }
  func.func @transform_8(%arg0: i32, %arg1: memref<2xi32, #tpu.memory_space<smem>>) -> (i32, i32) {
    %c0_i32 = arith.constant 0 : i32
    %c0_i32_0 = arith.constant 0 : i32
    %c0_i32_1 = arith.constant 0 : i32
    return %c0_i32, %c0_i32_0 : i32, i32
  }
}

</mosaic_0001>

<bundles_post_ra>
// kernel: tpu_custom_call.1
= control target key start
LH: loop header
LB: loop body
LE: loop exit
PB: predicated region body
PF: predicated region fallthrough
CT: control target
= control target key end

     0   :  { %s4872_s0 = inlined_call_operand.vmem [shape: s32[2], index: 0, kind: input, shape index: {}]   ;;  %s4873_s1 = inlined_call_operand.vmem [shape: f32[256,8], index: 1, kind: input, shape index: {}]   ;;  %s4874_s2 = inlined_call_operand.vmem [shape: f32[2,256], index: 2, kind: input, shape index: {}]   ;;  %s4875_s3 = inlined_call_operand.vmem [shape: f32[1,128], index: 3, kind: input, shape index: {}]   ;;  %s4876_s4 = inlined_call_operand.vmem [shape: f32[1,128], index: 4, kind: input, shape index: {}]   ;;  %s4877_s5 = inlined_call_operand.vmem [shape: bf16[2,128,128], index: 5, kind: input, shape index: {}]   ;;  %s4878_s6 = inlined_call_operand.vmem [shape: bf16[2,128,128], index: 6, kind: input, shape index: {}]   ;;  %s4879_s7 = inlined_call_operand.vmem [shape: f32[2,1,128], index: 7, kind: input, shape index: {}]   ;;  %s4880_s8 = inlined_call_operand.vmem [shape: f32[2,1], index: 8, kind: input, shape index: {}]   ;;  %s4881_s9 = inlined_call_operand.vmem [shape: f32[2,1], index: 9, kind: output, shape index: {}]  }
   0x1   :  { %s14_s11 = sshll.u32 %s4872_s0, 4  ;;  %s15_s11 = int_to_ptr.vmem [resolvable:$true] %s14_s11 }
   0x2   :  { %s3126_s12 = scalar_lea.vmem %s15_s11, 16  ;;  %p3131_p1 = scmp.lt.s32.totalorder %s15_s11, %s15_s11 }
   0x3   :  { %p3127_p0 = scmp.ne.s32.totalorder %s15_s11, %s3126_s12  ;;  %p3132_p2 = scmp.lt.s32.totalorder %s3126_s12, %s3126_s12 }
   0x5   :  { %p3133_p3 = por %p3132_p2, %p3131_p1 }
   0x7   :  { %p3134_p4 = pnand %p3133_p3, %p3127_p0 }
   0x9   :  { %3137 = shalt.err (!%p3134_p4)  }
   0xa   :  { %s3148_s13 = smov [#allocation3]  }
   0xb   :  { %17 = dma.vmem_to_smem %s15_s11, 16, %s3148_s13, [#allocation2] }
   0xc   :  { %3142 = dma.done.wait [#allocation2], 16 }
   0xd   :  { %3143 = vsyncadd [#allocation2], 4294967280 }
   0xe   :  { %19 = sfence }
   0xf   :  { %s3219_s14 = smov 0  }
  0x10 LB: > { %s2675_s0 = sadd.s32 4294967295, %s3146_s14   ;;  %p2678_p5 = scmp.ge.s32.totalorder %s3146_s14, 1  ;;  %s3146_s14 = sphi %s3219_s14, %s25_s14  }
  0x11   : > { %p314_p6 = scmp.lt.s32.totalorder %s3146_s14, 3 }
  0x13   : > { %p315_p7 = pnand %p2678_p5, %p314_p6 }
  0x15   : > { %318 = sbr.rel (%p315_p7) target bundleno = 1792 (0x700), region = 52 }
  0x1c   : > { %s2679_s15 = sshll.u32 %s2675_s0, 4  ;;  %p369_p8 = scmp.lt.s32.totalorder %s2675_s0, 1 }
  0x1d   : > { %p364_p9 = scmp.lt.s32.totalorder %s2679_s15, 31  ;;  %s373_s16 = sld [smem:[#allocation3 + %s2675_s0]] }
  0x1e   : > { %s370_s17 = scalar_select %p369_p8, %s2675_s0, 1 }
  0x1f   : > { %s5074_s15 = smov (!%p364_p9, %s2679_s15), 31  ;;  %s380_s19 = sld [smem:[#allocation3 + %s2675_s0]] }
  0x20   : > { %s2681_s18 = sshll.u32 %s370_s17, 1  ;;  %s2680_s20 = sshll.u32 %s5074_s15, 3 }
  0x21   : > { %s3230_s23 = scalar_lea.vmem %s4874_s2, %s2681_s18  ;;  %s3235_s26 = scalar_lea.vmem %s4873_s1, %s2680_s20 }
  0x22   : > { %s387_s27 = sld [smem:[#allocation3 + %s2675_s0]]  ;;  %p2686_p13 = scmp.ne.s32.totalorder %s2675_s0, 0 }
  0x23   : > { %p374_p10 = scmp.lt.s32.totalorder %s373_s16, 1  ;;  %v397_v0 = vld [vmem:[%s4880_s8] sm:$0x3] (!%p2686_p13)  ;;  %vm398_vm0 = vcmask (!%p2686_p13), 1024  }
  0x24   : > { %399 = vst.msk [vmem:[%s4881_s9] sm:$0x3] (!%p2686_p13), %vm398_vm0, %v397_v0 }
  0x25   : > { %s5076_s16 = smov (!%p374_p10, %s373_s16), 1  ;;  %p381_p11 = scmp.lt.s32.totalorder %s380_s19, 1 }
  0x26   : > { %s2740_s28 = sshll.u32 %s5076_s16, 6  ;;  %396 = sbr.rel (%p2686_p13) target bundleno = 45 (0x2d), region = 56 }
  0x27   : > { %s3240_s10 = scalar_lea.vmem %s4877_s5, %s2740_s28  ;;  %s5078_s19 = smov (!%p381_p11, %s380_s19), 1 }
  0x28   : > { %p388_p12 = scmp.lt.s32.totalorder %s387_s27, 1  ;;  %s2741_s11 = sshll.u32 %s5078_s19, 6 }
  0x29   : > { %s3247_s15 = scalar_lea.vmem %s4878_s6, %s2741_s11 }
  0x2a   : > { %s5080_s27 = smov (!%p388_p12, %s387_s27), 1 }
  0x2b   : > { %s390_s16 = scalar_lea.vmem %s4879_s7, %s5080_s27 }
  0x2d PF: > { %v3260_v1 = vld [vmem:[%s3235_s26 + $0x10] sm:$0xff]  ;;  %v3263_v2 = vld [vmem:[%s3235_s26] sm:$0xff]  ;;  %v3149_v3 = vmov 1   ;;  %v3270_v4 = vld [vmem:[%s3235_s26 + $0x18] sm:$0xff]  ;;  %v3150_v8 = vmov 2   ;;  %v3151_v10 = vmov 3  }
  0x2e   : > { %2894 = vset.pattern.permute.xlu1 %v3149_v3  ;;  %2893 = vset.pattern.permute.xlu0 %v3149_v3  ;;  %v3273_v5 = vld [vmem:[%s3235_s26 + $0x8] sm:$0xff]  ;;  %v3276_v6 = vld [vmem:[%s3235_s26 + $0x20] sm:$0xff]  ;;  %v3281_v7 = vld [vmem:[%s3235_s26 + $0x38] sm:$0xff]  ;;  %v3152_v13 = vmov 4   ;;  %v3153_v16 = vmov 5   ;;  %v3154_v19 = vmov 6   ;;  %v1704_v42 = vmul.f32 %v3263_v2, %v3263_v2 }
  0x2f   : > { %521 = vperm.xlu1 %2894, %v3260_v1   ;;  %513 = vperm.xlu0 %2893, %v3263_v2   ;;  %v3289_v9 = vld [vmem:[%s3235_s26 + $0x48] sm:$0xff]  ;;  %v3294_v11 = vld [vmem:[%s3235_s26 + $0x60] sm:$0xff]  ;;  %v3299_v12 = vld [vmem:[%s3235_s26 + $0x78] sm:$0xff]  ;;  %v4882_v20 = vmov 7   ;;  %vm1520_vm1 = vcmask 64512   ;;  %v1706_v46 = vmul.f32 %v3260_v1, %v3260_v1  ;;  %v1708_v54 = vmul.f32 %v3276_v6, %v3276_v6  ;;  %s3156_s0 = smov 8  }
  0x30   : > { %v3310_v14 = vld [vmem:[%s3235_s26 + $0x28] sm:$0xff]  ;;  %v3315_v15 = vld [vmem:[%s3235_s26 + $0x40] sm:$0xff]  ;;  %v3321_v17 = vld [vmem:[%s3235_s26 + $0x58] sm:$0xff]  ;;  %v1659_v40 = vsel %vm1520_vm1, %v3273_v5, 0.0  ;;  %v1662_v41 = vsel %vm1520_vm1, %v3260_v1, 0.0  ;;  %v1720_v45 = vsel %vm1520_vm1, %v1704_v42, 0.0 }
  0x31   : > { %v3326_v18 = vld [vmem:[%s3235_s26 + $0x68] sm:$0xff]  ;;  %v3347_v21 = vld [vmem:[%s3235_s26 + $0x30] sm:$0xff]  ;;  %v1726_v49 = vsel %vm1520_vm1, %v1706_v46, 0.0  ;;  %v1668_v50 = vsel %vm1520_vm1, %v3276_v6, 0.0  ;;  %v1732_v57 = vsel %vm1520_vm1, %v1708_v54, 0.0  ;;  %v1683_v63 = vsel %vm1520_vm1, %v3289_v9, 0.0 }
  0x32   : > { %v3405_v27 = vld [vmem:[%s3235_s26 + $0x50] sm:$0xff]  ;;  %v1674_v53 = vsel %vm1520_vm1, %v3347_v21, 0.0  ;;  %v1710_v58 = vmul.f32 %v3347_v21, %v3347_v21  ;;  %s3158_s19 = smov 16   ;;  %s3159_s25 = smov 24   ;;  %vm1537_vm2 = vcmask 130048   ;;  %vm1554_vm3 = vcmask 195584  }
  0x33   : > { %525 = vperm.xlu1 %2894, %v3270_v4   ;;  %517 = vperm.xlu0 %2893, %v3273_v5   ;;  %v3501_v60 = vld [vmem:[%s3235_s26 + $0x70] sm:$0xff]  ;;  %s3160_s28 = smov 32   ;;  %s3161_s29 = smov 40   ;;  %vm1571_vm4 = vcmask 261120   ;;  %vm1588_vm5 = vcmask 326656   ;;  %vm1605_vm6 = vcmask 392192  }
  0x34   : > { %v1738_v61 = vsel %vm1520_vm1, %v1710_v58, 0.0  ;;  %v1715_v58 = vmul.f32 %v3321_v17, %v3321_v17  ;;  %s3162_s30 = smov 48   ;;  %s3163_s11 = smov 56   ;;  %vm1622_vm7 = vcmask 457728   ;;  %vm1639_vm8 = vcmask 523264  }
  0x35   : > { %vm3165_vm9 = vmmov 0   ;;  %vm2595_vm10 = vcmask 1041408   ;;  %vm2600_vm11 = vcmask 1024  }
  0x37   : > { %2895 = vset.pattern.permute.xlu1 %v3150_v8  ;;  %529 = vperm.xlu0 %2893, %v3276_v6  }
  0x38   : > { %597 = vperm.xlu1 %2895, %v3273_v5  }
  0x3b   : > { %541 = vperm.xlu0 %2893, %v3281_v7  }
  0x3c   : > { %601 = vperm.xlu1 %2895, %v3260_v1  }
  0x3f   : > { %549 = vperm.xlu0 %2893, %v3289_v9  }
  0x40   : > { %2896 = vset.pattern.permute.xlu1 %v3151_v10 }
  0x41   : > { %673 = vperm.xlu1 %2896, %v3263_v2  }
  0x43   : > { %561 = vperm.xlu0 %2893, %v3294_v11  }
  0x45   : > { %681 = vperm.xlu1 %2896, %v3260_v1  }
  0x47   : > { %573 = vperm.xlu0 %2893, %v3299_v12  }
  0x49   : > { %685 = vperm.xlu1 %2896, %v3270_v4  }
  0x4b   : > { %2916 = vset.pattern.permute.xlu0 %v3150_v8 }
  0x4c   : > { %593 = vperm.xlu0 %2916, %v3263_v2  }
  0x4d   : > { %2897 = vset.pattern.permute.xlu1 %v3152_v13 }
  0x4e   : > { %757 = vperm.xlu1 %2897, %v3273_v5  }
  0x50   : > { %605 = vperm.xlu0 %2916, %v3270_v4  }
  0x52   : > { %761 = vperm.xlu1 %2897, %v3260_v1  }
  0x54   : > { %613 = vperm.xlu0 %2916, %v3310_v14  }
  0x56   : > { %2898 = vset.pattern.permute.xlu1 %v3153_v16 }
  0x57   : > { %833 = vperm.xlu1 %2898, %v3263_v2  }
  0x58   : > { %625 = vperm.xlu0 %2916, %v3315_v15  }
  0x5b   : > { %841 = vperm.xlu1 %2898, %v3260_v1  }
  0x5c   : > { %637 = vperm.xlu0 %2916, %v3321_v17  }
  0x5f   : > { %845 = vperm.xlu1 %2898, %v3270_v4  }
  0x60   : > { %645 = vperm.xlu0 %2916, %v3326_v18  }
  0x63   : > { %2899 = vset.pattern.permute.xlu1 %v3154_v19 }
  0x64   : > { %917 = vperm.xlu1 %2899, %v3273_v5   ;;  %2918 = vset.pattern.permute.xlu0 %v3151_v10 }
  0x65   : > { %677 = vperm.xlu0 %2918, %v3273_v5  }
  0x68   : > { %921 = vperm.xlu1 %2899, %v3260_v1  }
  0x69   : > { %689 = vperm.xlu0 %2918, %v3276_v6  }
  0x6c   : > { %2900 = vset.pattern.permute.xlu1 %v4882_v20 }
  0x6d   : > { %993 = vperm.xlu1 %2900, %v3263_v2   ;;  %701 = vperm.xlu0 %2918, %v3281_v7  }
  0x71   : > { %1001 = vperm.xlu1 %2900, %v3260_v1   ;;  %709 = vperm.xlu0 %2918, %v3289_v9  }
  0x75   : > { %1005 = vperm.xlu1 %2900, %v3270_v4   ;;  %721 = vperm.xlu0 %2918, %v3294_v11  }
  0x79   : > { %2901 = vset.pattern.permute.xlu1 %v3149_v3  ;;  %733 = vperm.xlu0 %2918, %v3299_v12  }
  0x7a   : > { %533 = vperm.xlu1 %2901, %v3310_v14  }
  0x7d   : > { %2920 = vset.pattern.permute.xlu0 %v3152_v13 }
  0x7e   : > { %537 = vperm.xlu1 %2901, %v3347_v21   ;;  %753 = vperm.xlu0 %2920, %v3263_v2  }
  0x82   : > { %2902 = vset.pattern.permute.xlu1 %v3150_v8  ;;  %765 = vperm.xlu0 %2920, %v3270_v4  }
  0x83   : > { %609 = vperm.xlu1 %2902, %v3276_v6  }
  0x86   : > { %773 = vperm.xlu0 %2920, %v3310_v14  }
  0x87   : > { %617 = vperm.xlu1 %2902, %v3347_v21  }
  0x8a   : > { %785 = vperm.xlu0 %2920, %v3315_v15  }
  0x8b   : > { %621 = vperm.xlu1 %2902, %v3281_v7  }
  0x8e   : > { %797 = vperm.xlu0 %2920, %v3321_v17  }
  0x8f   : > { %2903 = vset.pattern.permute.xlu1 %v3151_v10 }
  0x90   : > { %693 = vperm.xlu1 %2903, %v3310_v14  }
  0x92   : > { %805 = vperm.xlu0 %2920, %v3326_v18  }
  0x94   : > { %697 = vperm.xlu1 %2903, %v3347_v21  }
  0x96   : > { %2922 = vset.pattern.permute.xlu0 %v3153_v16 }
  0x97   : > { %837 = vperm.xlu0 %2922, %v3273_v5  }
  0x98   : > { %2904 = vset.pattern.permute.xlu1 %v3152_v13 }
  0x99   : > { %769 = vperm.xlu1 %2904, %v3276_v6  }
  0x9b   : > { %849 = vperm.xlu0 %2922, %v3276_v6  }
  0x9d   : > { %777 = vperm.xlu1 %2904, %v3347_v21  }
  0x9f   : > { %861 = vperm.xlu0 %2922, %v3281_v7  }
  0xa1   : > { %781 = vperm.xlu1 %2904, %v3281_v7  }
  0xa3   : > { %869 = vperm.xlu0 %2922, %v3289_v9  }
  0xa5   : > { %2905 = vset.pattern.permute.xlu1 %v3153_v16 }
  0xa6   : > { %853 = vperm.xlu1 %2905, %v3310_v14  }
  0xa7   : > { %881 = vperm.xlu0 %2922, %v3294_v11  }
  0xaa   : > { %857 = vperm.xlu1 %2905, %v3347_v21  }
  0xab   : > { %893 = vperm.xlu0 %2922, %v3299_v12  }
  0xae   : > { %v3378_v22 = vpop.permute.xlu1 %521  ;;  %2906 = vset.pattern.permute.xlu1 %v3154_v19  ;;  %v3437_v34 = vpop.permute.xlu0 %513 }
  0xaf   : > { %929 = vperm.xlu1 %2906, %v3276_v6   ;;  %2924 = vset.pattern.permute.xlu0 %v3154_v19 }
  0xb0   : > { %913 = vperm.xlu0 %2924, %v3263_v2  }
  0xb2   : > { %v3384_v23 = vpop.permute.xlu1 %525  ;;  %v3444_v36 = vpop.permute.xlu0 %517 }
  0xb3   : > { %937 = vperm.xlu1 %2906, %v3347_v21  }
  0xb4   : > { %925 = vperm.xlu0 %2924, %v3270_v4  }
  0xb6   : > { %v3449_v38 = vpop.permute.xlu0 %529 }
  0xb7   : > { %v3388_v24 = vpop.permute.xlu1 %597  ;;  %941 = vperm.xlu1 %2906, %v3281_v7  }
  0xb8   : > { %933 = vperm.xlu0 %2924, %v3310_v14  }
  0xba   : > { %v3461_v43 = vpop.permute.xlu0 %541 }
  0xbb   : > { %2907 = vset.pattern.permute.xlu1 %v4882_v20  ;;  %v3395_v25 = vpop.permute.xlu1 %601  ;;  %4888 = vst [vmem:[#allocation5_spill] sm:$0xff] %v3461_v43 }
  0xbc   : > { %1013 = vperm.xlu1 %2907, %v3310_v14   ;;  %945 = vperm.xlu0 %2924, %v3315_v15  }
  0xbe   : > { %v3470_v47 = vpop.permute.xlu0 %549 }
  0xbf   : > { %4889 = vst [vmem:[#allocation6_spill] sm:$0xff] %v3470_v47 }
  0xc0   : > { %1017 = vperm.xlu1 %2907, %v3347_v21   ;;  %957 = vperm.xlu0 %2924, %v3321_v17   ;;  %v3399_v26 = vpop.permute.xlu1 %673 }
  0xc2   : > { %v3479_v51 = vpop.permute.xlu0 %561 }
  0xc3   : > { %4890 = vst [vmem:[#allocation7_spill] sm:$0xff] %v3479_v51 }
  0xc4   : > { %2908 = vset.pattern.permute.xlu1 %v3149_v3  ;;  %965 = vperm.xlu0 %2924, %v3326_v18   ;;  %v3408_v28 = vpop.permute.xlu1 %681 }
  0xc5   : > { %545 = vperm.xlu1 %2908, %v3315_v15  }
  0xc6   : > { %v3489_v55 = vpop.permute.xlu0 %573 }
  0xc7   : > { %4891 = vst [vmem:[#allocation8_spill] sm:$0xff] %v3489_v55 }
  0xc8   : > { %2926 = vset.pattern.permute.xlu0 %v4882_v20  ;;  %v3414_v29 = vpop.permute.xlu1 %685 }
  0xc9   : > { %553 = vperm.xlu1 %2908, %v3405_v27   ;;  %997 = vperm.xlu0 %2926, %v3273_v5  }
  0xcb   : > { %v3497_v59 = vpop.permute.xlu0 %593 }
  0xcd   : > { %557 = vperm.xlu1 %2908, %v3321_v17   ;;  %1009 = vperm.xlu0 %2926, %v3276_v6   ;;  %v3419_v30 = vpop.permute.xlu1 %757 }
  0xcf   : > { %v3509_v0 = vpop.permute.xlu0 %605 }
  0xd1   : > { %2909 = vset.pattern.permute.xlu1 %v3150_v8  ;;  %1021 = vperm.xlu0 %2926, %v3281_v7   ;;  %v3425_v31 = vpop.permute.xlu1 %761 }
  0xd2   : > { %629 = vperm.xlu1 %2909, %v3289_v9  }
  0xd3   : > { %v3519_v42 = vpop.permute.xlu0 %613 }
  0xd4   : > { %4892 = vst [vmem:[#allocation9_spill] sm:$0xff] %v3519_v42 }
  0xd5   : > { %1029 = vperm.xlu0 %2926, %v3289_v9  }
  0xd6   : > { %633 = vperm.xlu1 %2909, %v3405_v27   ;;  %v3430_v32 = vpop.permute.xlu1 %833 }
  0xd9   : > { %1041 = vperm.xlu0 %2926, %v3294_v11  }
  0xda   : > { %2910 = vset.pattern.permute.xlu1 %v3151_v10  ;;  %v3433_v33 = vpop.permute.xlu1 %841 }
  0xdb   : > { %705 = vperm.xlu1 %2910, %v3315_v15  }
  0xdd   : > { %1053 = vperm.xlu0 %2926, %v3299_v12  }
  0xde   : > { %v3440_v35 = vpop.permute.xlu1 %845 }
  0xdf   : > { %713 = vperm.xlu1 %2910, %v3405_v27  }
  0xe3   : > { %717 = vperm.xlu1 %2910, %v3321_v17   ;;  %v3446_v37 = vpop.permute.xlu1 %917 }
  0xe7   : > { %2911 = vset.pattern.permute.xlu1 %v3152_v13  ;;  %v3451_v39 = vpop.permute.xlu1 %921 }
  0xe8   : > { %789 = vperm.xlu1 %2911, %v3289_v9  }
  0xec   : > { %793 = vperm.xlu1 %2911, %v3405_v27   ;;  %v3464_v44 = vpop.permute.xlu1 %993 }
  0xf0   : > { %2912 = vset.pattern.permute.xlu1 %v3153_v16  ;;  %v3472_v48 = vpop.permute.xlu1 %1001 }
  0xf1   : > { %865 = vperm.xlu1 %2912, %v3315_v15  }
  0xf4   : > { %v3481_v52 = vpop.permute.xlu1 %1005 }
  0xf5   : > { %873 = vperm.xlu1 %2912, %v3405_v27  }
  0xf9   : > { %877 = vperm.xlu1 %2912, %v3321_v17   ;;  %v3491_v56 = vpop.permute.xlu1 %533 }
  0xfc   : > { %1660 = vadd.xlane.f32.xlu0 %v1659_v40  ;;  %v1686_v40 = vsel %vm1520_vm1, %v3405_v27, 0.0 }
  0xfd   : > { %2913 = vset.pattern.permute.xlu1 %v3154_v19  ;;  %v3504_v62 = vpop.permute.xlu1 %537 }
  0xfe   : > { %949 = vperm.xlu1 %2913, %v3289_v9  }
 0x100   : > { %1663 = vadd.xlane.f32.xlu0 %v1662_v41  ;;  %v1712_v41 = vmul.f32 %v3315_v15, %v3315_v15 }
 0x102   : > { %953 = vperm.xlu1 %2913, %v3405_v27  }
 0x104   : > { %1721 = vadd.xlane.f32.xlu0 %v1720_v45  ;;  %v1744_v45 = vsel %vm1520_vm1, %v1712_v41, 0.0 }
 0x106   : > { %2914 = vset.pattern.permute.xlu1 %v4882_v20 }
 0x107   : > { %1025 = vperm.xlu1 %2914, %v3315_v15  }
 0x108   : > { %1727 = vadd.xlane.f32.xlu0 %v1726_v49 }
 0x10b   : > { %1033 = vperm.xlu1 %2914, %v3405_v27  }
 0x10c   : > { %1669 = vadd.xlane.f32.xlu0 %v1668_v50  ;;  %v1714_v50 = vmul.f32 %v3405_v27, %v3405_v27 }
 0x10f   : > { %1037 = vperm.xlu1 %2914, %v3321_v17  }
 0x110   : > { %1675 = vadd.xlane.f32.xlu0 %v1674_v53  ;;  %v3531_v53 = vpop.permute.xlu0 %625 }
 0x111   : > { %4893 = vst [vmem:[#allocation10_spill] sm:$0xff] %v3531_v53  ;;  %v656_v53 = vmul.f32 %v3497_v59, %v3263_v2  ;;  %v1677_v59 = vsel %vm1520_vm1, %v3281_v7, 0.0 }
 0x113   : > { %2915 = vset.pattern.permute.xlu1 %v3149_v3  ;;  %v3512_v3 = vpop.permute.xlu1 %609 }
 0x114   : > { %565 = vperm.xlu1 %2915, %v3326_v18   ;;  %1733 = vadd.xlane.f32.xlu0 %v1732_v57  ;;  %v1750_v57 = vsel %vm1520_vm1, %v1714_v50, 0.0 }
 0x117   : > { %v3525_v46 = vpop.permute.xlu1 %617 }
 0x118   : > { %569 = vperm.xlu1 %2915, %v3501_v60   ;;  %1739 = vadd.xlane.f32.xlu0 %v1738_v61  ;;  %v3540_v61 = vpop.permute.xlu0 %637 }
 0x119   : > { %4895 = vst [vmem:[#allocation12_spill] sm:$0xff] %v3540_v61  ;;  %v3157_v61 = vmov 0  }
 0x11a   : > { %2928 = vset.pattern.permute.xlu0 %v3157_v61 }
 0x11b   : > { %v3533_v54 = vpop.permute.xlu1 %621 }
 0x11c   : > { %2917 = vset.pattern.permute.xlu1 %v3150_v8  ;;  %1684 = vadd.xlane.f32.xlu0 %v1683_v63  ;;  %v1713_v8 = vmul.f32 %v3289_v9, %v3289_v9  ;;  %4894 = vst [vmem:[#allocation11_spill] sm:$0xff] %v3533_v54  ;;  %v1753_v63 = vsel %vm1520_vm1, %v1715_v58, 0.0  ;;  %v3548_v41 = vpop.permute.xlu0 %645 }
 0x11d   : > { %641 = vperm.xlu1 %2917, %v3294_v11   ;;  %4897 = vst [vmem:[#allocation14_spill] sm:$0xff] %v3548_v41 }
 0x11e   : > { %v1747_v49 = vsel %vm1520_vm1, %v1713_v8, 0.0 }
 0x120   : > { %1687 = vadd.xlane.f32.xlu0 %v1686_v40  ;;  %v3544_v40 = vpop.permute.xlu1 %693  ;;  %v3555_v8 = vpop.permute.xlu0 %677 }
 0x121   : > { %649 = vperm.xlu1 %2917, %v3501_v60   ;;  %4896 = vst [vmem:[#allocation13_spill] sm:$0xff] %v3544_v40 }
 0x124   : > { %1745 = vadd.xlane.f32.xlu0 %v1744_v45  ;;  %v3552_v45 = vpop.permute.xlu1 %697  ;;  %v3560_v50 = vpop.permute.xlu0 %689 }
 0x125   : > { %653 = vperm.xlu1 %2917, %v3299_v12  }
 0x128   : > { %1748 = vadd.xlane.f32.xlu0 %v1747_v49  ;;  %v3557_v49 = vpop.permute.xlu1 %769 }
 0x129   : > { %2919 = vset.pattern.permute.xlu1 %v3151_v10  ;;  %v1692_v10 = vsel %vm1520_vm1, %v3294_v11, 0.0 }
 0x12a   : > { %725 = vperm.xlu1 %2919, %v3326_v18  }
 0x12c   : > { %1751 = vadd.xlane.f32.xlu0 %v1750_v57  ;;  %v3566_v57 = vpop.permute.xlu0 %701 }
 0x12d   : > { %4898 = vst [vmem:[#allocation15_spill] sm:$0xff] %v3566_v57 }
 0x12e   : > { %729 = vperm.xlu1 %2919, %v3501_v60  }
 0x130   : > { %1754 = vadd.xlane.f32.xlu0 %v1753_v63  ;;  %v576_v63 = vmul.f32 %v3437_v34, %v3263_v2  ;;  %v4903_v34 = vmov 7  }
 0x132   : > { %2921 = vset.pattern.permute.xlu1 %v3152_v13  ;;  %v3564_v13 = vpop.permute.xlu1 %777 }
 0x133   : > { %801 = vperm.xlu1 %2921, %v3294_v11  }
 0x134   : > { %1693 = vadd.xlane.f32.xlu0 %v1692_v10  ;;  %v3575_v10 = vpop.permute.xlu0 %709 }
 0x135   : > { %4900 = vst [vmem:[#allocation17_spill] sm:$0xff] %v3575_v10 }
 0x136   : > { %v3569_v58 = vpop.permute.xlu1 %781 }
 0x137   : > { %809 = vperm.xlu1 %2921, %v3501_v60   ;;  %4899 = vst [vmem:[#allocation16_spill] sm:$0xff] %v3569_v58 }
 0x138   : > { %v3584_v41 = vpop.permute.xlu0 %721 }
 0x139   : > { %4902 = vst [vmem:[#allocation19_spill] sm:$0xff] %v3584_v41 }
 0x13a   : > { %v3580_v20 = vpop.permute.xlu1 %853 }
 0x13b   : > { %813 = vperm.xlu1 %2921, %v3299_v12   ;;  %4901 = vst [vmem:[#allocation18_spill] sm:$0xff] %v3580_v20 }
 0x13c   : > { %v3590_v55 = vpop.permute.xlu0 %733 }
 0x13d   : > { %4904 = vst [vmem:[#allocation20_spill] sm:$0xff] %v3590_v55  ;;  %v1698_v55 = vsel %vm1520_vm1, %v3501_v60, 0.0 }
 0x13f   : > { %2923 = vset.pattern.permute.xlu1 %v3153_v16  ;;  %v577_v16 = vmul.f32 %v3444_v36, %v3273_v5 }
 0x140   : > { %885 = vperm.xlu1 %2923, %v3326_v18   ;;  %v3596_v36 = vpop.permute.xlu0 %753 }
 0x144   : > { %889 = vperm.xlu1 %2923, %v3501_v60  }
 0x148   : > { %2925 = vset.pattern.permute.xlu1 %v3154_v19  ;;  %v3587_v19 = vpop.permute.xlu1 %857 }
 0x149   : > { %961 = vperm.xlu1 %2925, %v3294_v11  }
 0x14a   : > { %1088 = vrot.lane.b32.xlu0 %v576_v63, %s3156_s0 }
 0x14c   : > { %v3593_v63 = vpop.permute.xlu1 %929 }
 0x14d   : > { %969 = vperm.xlu1 %2925, %v3501_v60  }
 0x14e   : > { %1090 = vrot.lane.b32.xlu0 %v577_v16, %s3156_s0  ;;  %v3600_v16 = vpop.permute.xlu0 %765 }
 0x150   : > { %v3598_v10 = vpop.permute.xlu1 %937 }
 0x151   : > { %973 = vperm.xlu1 %2925, %v3299_v12  }
 0x152   : > { %v3604_v47 = vpop.permute.xlu0 %773 }
 0x153   : > { %4906 = vst [vmem:[#allocation22_spill] sm:$0xff] %v3604_v47 }
 0x154   : > { %v3602_v41 = vpop.permute.xlu1 %941 }
 0x155   : > { %2927 = vset.pattern.permute.xlu1 %v4903_v34  ;;  %4905 = vst [vmem:[#allocation21_spill] sm:$0xff] %v3602_v41 }
 0x156   : > { %1045 = vperm.xlu1 %2927, %v3326_v18   ;;  %v3610_v20 = vpop.permute.xlu0 %785 }
 0x157   : > { %4908 = vst [vmem:[#allocation24_spill] sm:$0xff] %v3610_v20 }
 0x158   : > { %v3608_v51 = vpop.permute.xlu1 %1013 }
 0x159   : > { %4907 = vst [vmem:[#allocation23_spill] sm:$0xff] %v3608_v51  ;;  %v1665_v51 = vsel %vm1520_vm1, %v3270_v4, 0.0 }
 0x15a   : > { %1049 = vperm.xlu1 %2927, %v3501_v60   ;;  %v3614_v57 = vpop.permute.xlu0 %797 }
 0x15b   : > { %4909 = vst [vmem:[#allocation25_spill] sm:$0xff] %v3614_v57  ;;  %v578_v57 = vmul.f32 %v3378_v22, %v3260_v1 }
 0x15c   : > { %v3612_v58 = vpop.permute.xlu1 %1017 }
 0x15e   : > { %2929 = vset.pattern.permute.xlu1 %v3157_v61  ;;  %v3618_v54 = vpop.permute.xlu0 %805  ;;  %v1656_v61 = vsel %vm1520_vm1, %v3263_v2, 0.0 }
 0x15f   : > { %4910 = vst [vmem:[#allocation26_spill] sm:$0xff] %v3618_v54 }
 0x160   : > { %v3616_v40 = vpop.permute.xlu1 %545 }
 0x162   : > { %v3628_v20 = vpop.permute.xlu0 %837 }
 0x164   : > { %v3622_v41 = vpop.permute.xlu1 %553 }
 0x165   : > { %4911 = vst [vmem:[#allocation27_spill] sm:$0xff] %v3622_v41  ;;  %v1680_v41 = vsel %vm1520_vm1, %v3315_v15, 0.0 }
 0x166   : > { %v3640_v42 = vpop.permute.xlu0 %849 }
 0x168   : > { %v3632_v47 = vpop.permute.xlu1 %557 }
 0x169   : > { %4912 = vst [vmem:[#allocation28_spill] sm:$0xff] %v3632_v47 }
 0x16d   : > { %1699 = vadd.xlane.f32.xlu0 %v1698_v55  ;;  %v1705_v55 = vmul.f32 %v3273_v5, %v3273_v5 }
 0x16f   : > { %v1723_v54 = vsel %vm1520_vm1, %v1705_v55, 0.0  ;;  %v3648_v55 = vpop.permute.xlu0 %861 }
 0x170   : > { %4914 = vst [vmem:[#allocation30_spill] sm:$0xff] %v3648_v55 }
 0x17e   : > { %1657 = vadd.xlane.f32.xlu1 %v1656_v61  ;;  %v1707_v61 = vmul.f32 %v3270_v4, %v3270_v4 }
 0x180   : > { %v1729_v22 = vsel %vm1520_vm1, %v1707_v61, 0.0 }
 0x182   : > { %1666 = vadd.xlane.f32.xlu1 %v1665_v51  ;;  %v3644_v51 = vpop.permute.xlu1 %629 }
 0x183   : > { %1092 = vrot.lane.b32.xlu0 %v578_v57, %s3156_s0  ;;  %4913 = vst [vmem:[#allocation29_spill] sm:$0xff] %v3644_v51  ;;  %v1671_v57 = vsel %vm1520_vm1, %v3310_v14, 0.0 }
 0x186   : > { %1724 = vadd.xlane.f32.xlu1 %v1723_v54  ;;  %v3650_v47 = vpop.permute.xlu1 %633  ;;  %v1709_v54 = vmul.f32 %v3310_v14, %v3310_v14 }
 0x187   : > { %1152 = vrot.lane.b32.xlu0 %v656_v53, %s3158_s19  ;;  %4915 = vst [vmem:[#allocation31_spill] sm:$0xff] %v3650_v47  ;;  %v3656_v53 = vpop.permute.xlu0 %869 }
 0x188   : > { %4916 = vst [vmem:[#allocation32_spill] sm:$0xff] %v3656_v53  ;;  %v1735_v61 = vsel %vm1520_vm1, %v1709_v54, 0.0  ;;  %v1716_v54 = vmul.f32 %v3294_v11, %v3294_v11 }
 0x18a   : > { %1730 = vadd.xlane.f32.xlu1 %v1729_v22  ;;  %v1711_v22 = vmul.f32 %v3281_v7, %v3281_v7  ;;  %v3661_v51 = vpop.permute.xlu1 %705 }
 0x18b   : > { %4917 = vst [vmem:[#allocation33_spill] sm:$0xff] %v3661_v51  ;;  %v3664_v55 = vpop.permute.xlu0 %881 }
 0x18c   : > { %4918 = vst [vmem:[#allocation34_spill] sm:$0xff] %v3664_v55 }
 0x18e   : > { %1672 = vadd.xlane.f32.xlu1 %v1671_v57  ;;  %v1741_v57 = vsel %vm1520_vm1, %v1711_v22, 0.0  ;;  %v3666_v47 = vpop.permute.xlu1 %713  ;;  %v1756_v22 = vsel %vm1520_vm1, %v1716_v54, 0.0 }
 0x18f   : > { %4919 = vst [vmem:[#allocation35_spill] sm:$0xff] %v3666_v47  ;;  %v3670_v53 = vpop.permute.xlu0 %893 }
 0x190   : > { %4920 = vst [vmem:[#allocation36_spill] sm:$0xff] %v3670_v53 }
 0x192   : > { %1678 = vadd.xlane.f32.xlu1 %v1677_v59  ;;  %v1689_v59 = vsel %vm1520_vm1, %v3321_v17, 0.0 }
 0x193   : > { %v3681_v55 = vpop.permute.xlu0 %913 }
 0x196   : > { %1736 = vadd.xlane.f32.xlu1 %v1735_v61  ;;  %v3676_v61 = vpop.permute.xlu1 %717 }
 0x197   : > { %4921 = vst [vmem:[#allocation37_spill] sm:$0xff] %v3676_v61  ;;  %v3687_v47 = vpop.permute.xlu0 %925 }
 0x19a   : > { %1742 = vadd.xlane.f32.xlu1 %v1741_v57  ;;  %v1695_v57 = vsel %vm1520_vm1, %v3326_v18, 0.0  ;;  %v3683_v53 = vpop.permute.xlu1 %789 }
 0x19b   : > { %4922 = vst [vmem:[#allocation38_spill] sm:$0xff] %v3683_v53  ;;  %v658_v53 = vmul.f32 %v3395_v25, %v3260_v1 }
 0x19e   : > { %1681 = vadd.xlane.f32.xlu1 %v1680_v41  ;;  %v1701_v41 = vsel %vm1520_vm1, %v3299_v12, 0.0  ;;  %v3689_v51 = vpop.permute.xlu1 %793 }
 0x1a2   : > { %1690 = vadd.xlane.f32.xlu1 %v1689_v59  ;;  %v3691_v59 = vpop.permute.xlu0 %933  ;;  %v3693_v54 = vpop.permute.xlu1 %865 }
 0x1a3   : > { %4923 = vst [vmem:[#allocation39_spill] sm:$0xff] %v3691_v59  ;;  %4924 = vst [vmem:[#allocation40_spill] sm:$0xff] %v3693_v54 }
 0x1a6   : > { %1757 = vadd.xlane.f32.xlu0 %v1756_v22  ;;  %1696 = vadd.xlane.f32.xlu1 %v1695_v57  ;;  %v3695_v61 = vpop.permute.xlu0 %945  ;;  %v579_v22 = vmul.f32 %v3384_v23, %v3270_v4  ;;  %v3699_v57 = vpop.permute.xlu1 %873 }
 0x1a7   : > { %4925 = vst [vmem:[#allocation41_spill] sm:$0xff] %v3695_v61  ;;  %4926 = vst [vmem:[#allocation42_spill] sm:$0xff] %v3699_v57  ;;  %v736_v61 = vmul.f32 %v3399_v26, %v3263_v2 }
 0x1aa   : > { %1702 = vadd.xlane.f32.xlu1 %v1701_v41  ;;  %v3704_v43 = vpop.permute.xlu0 %957  ;;  %v657_v41 = vmul.f32 %v3388_v24, %v3273_v5  ;;  %v3711_v59 = vpop.permute.xlu1 %877 }
 0x1ab   : > { %4927 = vst [vmem:[#allocation43_spill] sm:$0xff] %v3704_v43  ;;  %4928 = vst [vmem:[#allocation44_spill] sm:$0xff] %v3711_v59 }
 0x1ae   : > { %v3715_v23 = vpop.permute.xlu0 %965  ;;  %v3717_v25 = vpop.permute.xlu1 %949 }
 0x1af   : > { %4929 = vst [vmem:[#allocation45_spill] sm:$0xff] %v3715_v23  ;;  %4930 = vst [vmem:[#allocation46_spill] sm:$0xff] %v3717_v25  ;;  %v1717_v25 = vmul.f32 %v3326_v18, %v3326_v18  ;;  %v659_v18 = vmul.f32 %v3509_v0, %v3270_v4 }
 0x1bb   : > { %1094 = vrot.lane.b32.xlu1 %v579_v22, %s3156_s0  ;;  %v3719_v22 = vpop.permute.xlu0 %997 }
 0x1bc   : > { %1156 = vrot.lane.b32.xlu0 %v658_v53, %s3158_s19  ;;  %v3721_v53 = vpop.permute.xlu1 %953 }
 0x1bd   : > { %4931 = vst [vmem:[#allocation47_spill] sm:$0xff] %v3721_v53 }
 0x1bf   : > { %1154 = vrot.lane.b32.xlu1 %v657_v41, %s3158_s19  ;;  %v3723_v43 = vpop.permute.xlu0 %1009  ;;  %v1718_v41 = vmul.f32 %v3501_v60, %v3501_v60 }
 0x1c0   : > { %1216 = vrot.lane.b32.xlu0 %v736_v61, %s3159_s25  ;;  %v3725_v24 = vpop.permute.xlu1 %1025 }
 0x1c1   : > { %4932 = vst [vmem:[#allocation48_spill] sm:$0xff] %v3725_v24  ;;  %v1762_v23 = vsel %vm1520_vm1, %v1718_v41, 0.0  ;;  %v1759_v24 = vsel %vm1520_vm1, %v1717_v25, 0.0  ;;  %v737_v25 = vmul.f32 %v3555_v8, %v3273_v5  ;;  %v816_v8 = vmul.f32 %v3596_v36, %v3263_v2 }
 0x1c2   : > { %v898_v36 = vmul.f32 %v3433_v33, %v3260_v1  ;;  %v978_v33 = vmul.f32 %v3451_v39, %v3260_v1 }
 0x1c3   : > { %v3727_v26 = vpop.permute.xlu0 %1021 }
 0x1c4   : > { %4933 = vst [vmem:[#allocation49_spill] sm:$0xff] %v3727_v26  ;;  %v3729_v59 = vpop.permute.xlu1 %1033 }
 0x1c5   : > { %4934 = vst [vmem:[#allocation50_spill] sm:$0xff] %v3729_v59 }
 0x1c7   : > { %v3733_v61 = vpop.permute.xlu0 %1029 }
 0x1c8   : > { %4935 = vst [vmem:[#allocation51_spill] sm:$0xff] %v3733_v61  ;;  %v3738_v57 = vpop.permute.xlu1 %1037 }
 0x1c9   : > { %4936 = vst [vmem:[#allocation52_spill] sm:$0xff] %v3738_v57 }
 0x1cb   : > { %v3740_v53 = vpop.permute.xlu0 %1041 }
 0x1cc   : > { %4937 = vst [vmem:[#allocation53_spill] sm:$0xff] %v3740_v53  ;;  %v3743_v26 = vpop.permute.xlu1 %565 }
 0x1cd   : > { %4938 = vst [vmem:[#allocation54_spill] sm:$0xff] %v3743_v26 }
 0x1cf   : > { %v3745_v59 = vpop.permute.xlu0 %1053 }
 0x1d0   : > { %4939 = vst [vmem:[#allocation55_spill] sm:$0xff] %v3745_v59  ;;  %v3747_v54 = vpop.permute.xlu1 %569 }
 0x1d3   : > { %v3749_v61 = vpop.xlane.xlu0 %1660 }
 0x1d4   : > { %v3751_v41 = vpop.permute.xlu1 %641 }
 0x1d7   : > { %v3755_v57 = vpop.xlane.xlu0 %1663 }
 0x1df   : > { %1763 = vadd.xlane.f32.xlu0 %v1762_v23  ;;  %v3758_v23 = vpop.permute.xlu1 %649 }
 0x1e3   : > { %1760 = vadd.xlane.f32.xlu1 %v1759_v24  ;;  %v3763_v24 = vpop.xlane.xlu0 %1721  ;;  %v3767_v59 = vpop.permute.xlu1 %653 }
 0x1e4   : > { %4940 = vst [vmem:[#allocation56_spill] sm:$0xff] %v3767_v59 }
 0x1e7   : > { %v3770_v0 = vpop.xlane.xlu0 %1727  ;;  %v3774_v26 = vpop.permute.xlu1 %725 }
 0x1e8   : > { %4941 = vst [vmem:[#allocation57_spill] sm:$0xff] %v3774_v26 }
 0x1eb   : > { %v3779_v53 = vpop.xlane.xlu0 %1669  ;;  %v3784_v59 = vpop.permute.xlu1 %729 }
 0x1ef   : > { %v3791_v26 = vpop.permute.xlu1 %801 }
 0x1f4   : > { %1158 = vrot.lane.b32.xlu1 %v659_v18, %s3158_s19  ;;  %v738_v18 = vmul.f32 %v3408_v28, %v3260_v1  ;;  %v3787_v28 = vpop.xlane.xlu0 %1675 }
 0x1f5   : > { %418 = vperm.xlu0 %2928, %v3263_v2   ;;  %4942 = vst [vmem:[#allocation58_spill] sm:$0xff] %v3787_v28 }
 0x1f8   : > { %1218 = vrot.lane.b32.xlu1 %v737_v25, %s3159_s25  ;;  %v818_v25 = vmul.f32 %v3425_v31, %v3260_v1  ;;  %v976_v31 = vmul.f32 %v3681_v55, %v3263_v2  ;;  %v1056_v55 = vmul.f32 %v3464_v44, %v3263_v2  ;;  %v580_v44 = vmul.f32 %v3449_v38, %v3276_v6 }
 0x1f9   : > { %438 = vperm.xlu0 %2928, %v3276_v6   ;;  %v660_v38 = vmul.f32 %v3512_v3, %v3276_v6 }
 0x1fd   : > { %448 = vperm.xlu0 %2928, %v3347_v21  }
 0x201   : > { %1220 = vrot.lane.b32.xlu0 %v738_v18, %s3159_s25  ;;  %v896_v18 = vmul.f32 %v3430_v32, %v3263_v2  ;;  %v1719_v32 = vmul.f32 %v3299_v12, %v3299_v12 }
 0x205   : > { %1280 = vrot.lane.b32.xlu0 %v816_v8, %s3160_s28  ;;  %v3796_v8 = vpop.xlane.xlu0 %1733 }
 0x206   : > { %4943 = vst [vmem:[#allocation59_spill] sm:$0xff] %v3796_v8 }
 0x209   : > { %1284 = vrot.lane.b32.xlu0 %v818_v25, %s3160_s28  ;;  %v3801_v25 = vpop.permute.xlu1 %809  ;;  %v3806_v28 = vpop.xlane.xlu0 %1739 }
 0x20d   : > { %1344 = vrot.lane.b32.xlu0 %v896_v18, %s3161_s29  ;;  %v3810_v18 = vpop.permute.xlu1 %813  ;;  %v3816_v8 = vpop.xlane.xlu0 %1684 }
 0x20e   : > { %4944 = vst [vmem:[#allocation60_spill] sm:$0xff] %v3816_v8 }
 0x211   : > { %1348 = vrot.lane.b32.xlu0 %v898_v36, %s3161_s29  ;;  %v1765_v36 = vsel %vm1520_vm1, %v1719_v32, 0.0  ;;  %v3819_v12 = vpop.permute.xlu1 %885  ;;  %v3822_v39 = vpop.xlane.xlu0 %1687 }
 0x212   : > { %4945 = vst [vmem:[#allocation61_spill] sm:$0xff] %v3822_v39 }
 0x215   : > { %1408 = vrot.lane.b32.xlu0 %v976_v31, %s3162_s30  ;;  %v1058_v31 = vmul.f32 %v3472_v48, %v3260_v1  ;;  %v3829_v2 = vpop.xlane.xlu0 %1745  ;;  %v582_v48 = vmul.f32 %v3504_v62, %v3347_v21 }
 0x216   : > { %4946 = vst [vmem:[#allocation62_spill] sm:$0xff] %v3829_v2 }
 0x219   : > { %1412 = vrot.lane.b32.xlu0 %v978_v33, %s3162_s30  ;;  %v3826_v33 = vpop.permute.xlu1 %889 }
 0x21c   : > { %1766 = vadd.xlane.f32.xlu1 %v1765_v36  ;;  %v3838_v36 = vpop.xlane.xlu0 %1748 }
 0x21d   : > { %1472 = vrot.lane.b32.xlu0 %v1056_v55, %s3163_s11  ;;  %v3834_v32 = vpop.permute.xlu1 %961  ;;  %4947 = vst [vmem:[#allocation63_spill] sm:$0xff] %v3838_v36 }
 0x221   : > { %458 = vperm.xlu0 %2928, %v3315_v15   ;;  %v3842_v55 = vpop.permute.xlu1 %969 }
 0x225   : > { %1476 = vrot.lane.b32.xlu0 %v1058_v31, %s3163_s11  ;;  %v3848_v31 = vpop.xlane.xlu0 %1751  ;;  %v3854_v36 = vpop.permute.xlu1 %973 }
 0x226   : > { %4948 = vst [vmem:[#allocation64_spill] sm:$0xff] %v3848_v31  ;;  %4949 = vst [vmem:[#allocation65_spill] sm:$0xff] %v3854_v36 }
 0x229   : > { %468 = vperm.xlu0 %2928, %v3405_v27   ;;  %v3858_v62 = vpop.xlane.xlu0 %1754  ;;  %v3862_v3 = vpop.permute.xlu1 %1045 }
 0x22a   : > { %4950 = vst [vmem:[#allocation66_spill] sm:$0xff] %v3858_v62  ;;  %4951 = vst [vmem:[#allocation67_spill] sm:$0xff] %v3862_v3 }
 0x22d   : > { %1096 = vrot.lane.b32.xlu0 %v580_v44, %s3156_s0  ;;  %423 = vperm.xlu1 %2929, %v3273_v5   ;;  %v662_v44 = vmul.f32 %v3525_v46, %v3347_v21  ;;  %v739_v46 = vmul.f32 %v3414_v29, %v3270_v4  ;;  %v822_v29 = vmul.f32 %v3564_v13, %v3347_v21 }
 0x22e   : > { %v899_v13 = vmul.f32 %v3440_v35, %v3270_v4 }
 0x231   : > { %1100 = vrot.lane.b32.xlu0 %v582_v48, %s3156_s0  ;;  %428 = vperm.xlu1 %2929, %v3260_v1   ;;  %v740_v1 = vmul.f32 %v3560_v50, %v3276_v6  ;;  %v742_v48 = vmul.f32 %v3552_v45, %v3347_v21  ;;  %v817_v50 = vmul.f32 %v3419_v30, %v3273_v5 }
 0x232   : > { %v819_v45 = vmul.f32 %v3600_v16, %v3270_v4  ;;  %v897_v30 = vmul.f32 %v3628_v20, %v3273_v5  ;;  %v902_v16 = vmul.f32 %v3587_v19, %v3347_v21  ;;  %v2931_v20 = vld [vmem:[%s3240_s10] sm:$0xff]   ;;  %v2932_v19 = vld [vmem:[%s3240_s10 + $0x8] sm:$0xff]  }
 0x233   : > { %2783 = vmatprep.subr.bf16.mxu0 %v2931_v20 }
 0x234   : > { %2784 = vmatpush3.bf16.msra.mxu0 %v2931_v20  ;;  %v2935_v20 = vld [vmem:[%s3240_s10 + $0x20] sm:$0xff]  }
 0x235   : > { %1160 = vrot.lane.b32.xlu0 %v660_v38, %s3158_s19  ;;  %433 = vperm.xlu1 %2929, %v3270_v4   ;;  %v3870_v38 = vpop.xlane.xlu0 %1693 }
 0x236   : > { %4952 = vst [vmem:[#allocation68_spill] sm:$0xff] %v3870_v38  ;;  %2785 = vmatprep.subr.bf16.mxu0 %v2932_v19 }
 0x238   : > { %2786 = vmatpush3.bf16.msra.mxu0 %v2932_v19  ;;  %v2936_v19 = vld [vmem:[%s3240_s10 + $0x28] sm:$0xff]  }
 0x239   : > { %1164 = vrot.lane.b32.xlu0 %v662_v44, %s3158_s19  ;;  %443 = vperm.xlu1 %2929, %v3310_v14   ;;  %v820_v44 = vmul.f32 %v3557_v49, %v3276_v6  ;;  %v900_v49 = vmul.f32 %v3640_v42, %v3276_v6  ;;  %v977_v42 = vmul.f32 %v3446_v37, %v3273_v5  ;;  %v2933_v37 = vld [vmem:[%s3240_s10 + $0x10] sm:$0xff]  }
 0x23a   : > { %v982_v5 = vmul.f32 %v3598_v10, %v3347_v21  ;;  %2787 = vmatprep.subr.bf16.mxu0 %v2933_v37  ;;  %v3937_v10 = vld [vmem:[%s3235_s26 + $0x20] sm:$0xff] }
 0x23b   : > { %4954 = vst [vmem:[#allocation70_spill] sm:$0xff] %v3937_v10 }
 0x23c   : > { %2788 = vmatpush3.bf16.msra.mxu0 %v2933_v37  ;;  %v2938_v37 = vld [vmem:[%s3240_s10 + $0x38] sm:$0xff]  }
 0x23d   : > { %1224 = vrot.lane.b32.xlu0 %v740_v1, %s3159_s25  ;;  %453 = vperm.xlu1 %2929, %v3281_v7   ;;  %v3878_v1 = vpop.permute.xlu1 %1049  ;;  %v3882_v7 = vpop.permute.xlu0 %1088 }
 0x241   : > { %1228 = vrot.lane.b32.xlu0 %v742_v48, %s3159_s25  ;;  %1222 = vrot.lane.b32.xlu1 %v739_v46, %s3159_s25  ;;  %v3888_v46 = vpop.xlane.xlu1 %1657  ;;  %v3896_v48 = vpop.permute.xlu0 %1090 }
 0x245   : > { %1288 = vrot.lane.b32.xlu0 %v820_v44, %s3160_s28  ;;  %1282 = vrot.lane.b32.xlu1 %v817_v50, %s3160_s28  ;;  %v3898_v50 = vpop.xlane.xlu1 %1666  ;;  %v3906_v44 = vpop.xlane.xlu0 %1699 }
 0x246   : > { %4953 = vst [vmem:[#allocation69_spill] sm:$0xff] %v3906_v44 }
 0x249   : > { %1292 = vrot.lane.b32.xlu0 %v822_v29, %s3160_s28  ;;  %1286 = vrot.lane.b32.xlu1 %v819_v45, %s3160_s28  ;;  %v980_v29 = vmul.f32 %v3593_v63, %v3276_v6  ;;  %v3915_v35 = vpop.xlane.xlu1 %1724  ;;  %v3920_v45 = vpop.permute.xlu0 %1092  ;;  %v979_v6 = vmul.f32 %v3687_v47, %v3270_v4  ;;  %v1060_v4 = vmul.f32 %v3937_v10, %v3723_v43  ;;  %v3954_v43 = vld [vmem:[%s3235_s26 + $0x18] sm:$0xff] }
 0x24d   : > { %1352 = vrot.lane.b32.xlu0 %v900_v49, %s3161_s29  ;;  %1346 = vrot.lane.b32.xlu1 %v897_v30, %s3161_s29  ;;  %v3927_v63 = vpop.xlane.xlu1 %1730  ;;  %v3932_v30 = vld [vmem:[%s3235_s26 + $0x8] sm:$0xff]  ;;  %v3941_v47 = vpop.permute.xlu0 %1152 }
 0x24e   : > { %v1057_v49 = vmul.f32 %v3932_v30, %v3719_v22 }
 0x251   : > { %1356 = vrot.lane.b32.xlu0 %v902_v16, %s3161_s29  ;;  %1350 = vrot.lane.b32.xlu1 %v899_v13, %s3161_s29  ;;  %v2934_v13 = vld [vmem:[%s3240_s10 + $0x18] sm:$0xff]   ;;  %v3946_v16 = vpop.xlane.xlu1 %1672  ;;  %v3948_v22 = vpop.xlane.xlu0 %1757 }
 0x252   : > { %2789 = vmatprep.subr.bf16.mxu0 %v2934_v13  ;;  %4955 = vst [vmem:[#allocation71_spill] sm:$0xff] %v3948_v22 }
 0x253   : > { %2790 = vmatpush3.bf16.msra.mxu0 %v2934_v13 }
 0x254   : > { %2791 = vmatprep.subr.bf16.mxu0 %v2935_v20 }
 0x255   : > { %1416 = vrot.lane.b32.xlu0 %v980_v29, %s3162_s30  ;;  %1410 = vrot.lane.b32.xlu1 %v977_v42, %s3162_s30  ;;  %v1059_v42 = vmul.f32 %v3954_v43, %v3481_v52  ;;  %v1062_v29 = vmul.f32 %v3612_v58, %v3347_v21  ;;  %v581_v21 = vmul.f32 %v3491_v56, %v3310_v14 }
 0x256   : > { %v584_v52 = vmul.f32 %v3616_v40, %v3315_v15  ;;  %v4959_v40 = vld [vmem:[#allocation27_spill] sm:$0xff] }
 0x257   : > { %2792 = vmatpush3.bf16.msra.mxu0 %v2935_v20 }
 0x258   : > { %2793 = vmatprep.subr.bf16.mxu0 %v2936_v19 }
 0x259   : > { %1420 = vrot.lane.b32.xlu0 %v982_v5, %s3162_s30  ;;  %1414 = vrot.lane.b32.xlu1 %v979_v6, %s3162_s30  ;;  %v3961_v5 = vpop.xlane.xlu1 %1678 }
 0x25a   : > { %4956 = vst [vmem:[#allocation72_spill] sm:$0xff] %v3961_v5 }
 0x25b   : > { %2794 = vmatpush3.bf16.msra.mxu0 %v2936_v19 }
 0x25d   : > { %1480 = vrot.lane.b32.xlu0 %v1060_v4, %s3163_s11  ;;  %1474 = vrot.lane.b32.xlu1 %v1057_v49, %s3163_s11  ;;  %v3974_v58 = vpop.xlane.xlu1 %1736  ;;  %v4958_v49 = vld [vmem:[#allocation5_spill] sm:$0xff]  ;;  %v586_v4 = vmul.f32 %v4959_v40, %v3405_v27 }
 0x261   : > { %478 = vperm.xlu0 %2928, %v3294_v11   ;;  %463 = vperm.xlu1 %2929, %v3289_v9   ;;  %v3965_v11 = vpop.permute.xlu0 %1156  ;;  %v2937_v9 = vld [vmem:[%s3240_s10 + $0x30] sm:$0xff]   ;;  %v3991_v20 = vpop.xlane.xlu1 %1742 }
 0x262   : > { %2795 = vmatprep.subr.bf16.mxu0 %v2937_v9  ;;  %4961 = vst [vmem:[#allocation27_spill] sm:$0xff] %v3991_v20  ;;  %v5003_v20 = vld [vmem:[#allocation29_spill] sm:$0xff] }
 0x263   : > { %2796 = vmatpush3.bf16.msra.mxu0 %v2937_v9 }
 0x264   : > { %2797 = vmatprep.subr.bf16.mxu0 %v2938_v37 }
 0x265   : > { %1484 = vrot.lane.b32.xlu0 %v1062_v29, %s3163_s11  ;;  %1478 = vrot.lane.b32.xlu1 %v1059_v42, %s3163_s11  ;;  %v3976_v6 = vpop.permute.xlu0 %1216  ;;  %v4962_v42 = vld [vmem:[#allocation9_spill] sm:$0xff]  ;;  %v4963_v29 = vld [vmem:[#allocation10_spill] sm:$0xff] }
 0x266   : > { %v664_v19 = vmul.f32 %v4963_v29, %v3315_v15 }
 0x267   : > { %2798 = vmatpush3.bf16.msra.mxu0 %v2938_v37  ;;  %v4965_v37 = vld [vmem:[#allocation31_spill] sm:$0xff] }
 0x269   : > { %488 = vperm.xlu0 %2928, %v3501_v60   ;;  %473 = vperm.xlu1 %2929, %v3321_v17   ;;  %v3983_v17 = vld [vmem:[%s3235_s26 + $0x38] sm:$0xff] }
 0x26a   : > { %4957 = vst [vmem:[#allocation73_spill] sm:$0xff] %v3983_v17  ;;  %v583_v56 = vmul.f32 %v3983_v17, %v4958_v49  ;;  %v666_v49 = vmul.f32 %v4965_v37, %v3405_v27  ;;  %v4972_v37 = vld [vmem:[#allocation15_spill] sm:$0xff] }
 0x26c   : > { %v3989_v13 = vpop.xlane.xlu0 %1763 }
 0x26d   : > { %1104 = vrot.lane.b32.xlu0 %v584_v52, %s3156_s0  ;;  %1098 = vrot.lane.b32.xlu1 %v581_v21, %s3156_s0  ;;  %4960 = vst [vmem:[#allocation5_spill] sm:$0xff] %v3989_v13  ;;  %v4964_v21 = vld [vmem:[#allocation11_spill] sm:$0xff]  ;;  %v743_v13 = vmul.f32 %v3983_v17, %v4972_v37 }
 0x26e   : > { %2930 = vset.pattern.permute.xlu0 %v4903_v34  ;;  %v661_v34 = vmul.f32 %v4962_v42, %v3310_v14  ;;  %v663_v52 = vmul.f32 %v3983_v17, %v4964_v21 }
 0x271   : > { %1108 = vrot.lane.b32.xlu0 %v586_v4, %s3156_s0  ;;  %1102 = vrot.lane.b32.xlu1 %v583_v56, %s3156_s0  ;;  %v4007_v56 = vpop.xlane.xlu1 %1681  ;;  %v4968_v4 = vld [vmem:[#allocation13_spill] sm:$0xff] }
 0x272   : > { %4966 = vst [vmem:[#allocation9_spill] sm:$0xff] %v4007_v56  ;;  %v741_v42 = vmul.f32 %v4968_v4, %v3310_v14  ;;  %v4032_v14 = vld [vmem:[%s3235_s26 + $0x28] sm:$0xff] }
 0x273   : > { %4974 = vst [vmem:[#allocation13_spill] sm:$0xff] %v4032_v14 }
 0x274   : > { %v3999_v9 = vpop.permute.xlu0 %418 }
 0x275   : > { %1168 = vrot.lane.b32.xlu0 %v664_v19, %s3158_s19  ;;  %1162 = vrot.lane.b32.xlu1 %v661_v34, %s3158_s19  ;;  %v4969_v34 = vld [vmem:[#allocation33_spill] sm:$0xff]  ;;  %v4019_v21 = vpop.xlane.xlu1 %1690 }
 0x276   : > { %v744_v29 = vmul.f32 %v4969_v34, %v3315_v15  ;;  %4971 = vst [vmem:[#allocation31_spill] sm:$0xff] %v4019_v21  ;;  %v4975_v15 = vld [vmem:[#allocation22_spill] sm:$0xff]  ;;  %v4037_v34 = vld [vmem:[%s3235_s26 + $0x40] sm:$0xff] }
 0x277   : > { %v821_v4 = vmul.f32 %v4032_v14, %v4975_v15  ;;  %4976 = vst [vmem:[#allocation33_spill] sm:$0xff] %v4037_v34 }
 0x278   : > { %v4009_v40 = vpop.permute.xlu0 %438 }
 0x279   : > { %4967 = vst [vmem:[#allocation10_spill] sm:$0xff] %v4009_v40  ;;  %1172 = vrot.lane.b32.xlu0 %v666_v49, %s3158_s19  ;;  %1166 = vrot.lane.b32.xlu1 %v663_v52, %s3158_s19  ;;  %v4973_v49 = vld [vmem:[#allocation35_spill] sm:$0xff]  ;;  %v4041_v37 = vpop.xlane.xlu1 %1696 }
 0x27a   : > { %v746_v52 = vmul.f32 %v4973_v49, %v3405_v27  ;;  %4978 = vst [vmem:[#allocation15_spill] sm:$0xff] %v4041_v37  ;;  %v4979_v49 = vld [vmem:[#allocation16_spill] sm:$0xff] }
 0x27c   : > { %v4017_v19 = vpop.permute.xlu0 %448 }
 0x27d   : > { %4970 = vst [vmem:[#allocation11_spill] sm:$0xff] %v4017_v19  ;;  %1232 = vrot.lane.b32.xlu0 %v744_v29, %s3159_s25  ;;  %1226 = vrot.lane.b32.xlu1 %v741_v42, %s3159_s25  ;;  %v4977_v42 = vld [vmem:[#allocation24_spill] sm:$0xff]  ;;  %v4053_v38 = vpop.xlane.xlu1 %1702  ;;  %v670_v19 = vmul.f32 %v3758_v23, %v3501_v60 }
 0x27e   : > { %v824_v29 = vmul.f32 %v4037_v34, %v4977_v42  ;;  %4980 = vst [vmem:[#allocation35_spill] sm:$0xff] %v4053_v38  ;;  %v4981_v42 = vld [vmem:[#allocation18_spill] sm:$0xff] }
 0x27f   : > { %v901_v37 = vmul.f32 %v4032_v14, %v4981_v42  ;;  %v4984_v38 = vld [vmem:[#allocation42_spill] sm:$0xff]  ;;  %v4985_v42 = vld [vmem:[#allocation39_spill] sm:$0xff] }
 0x280   : > { %v4027_v44 = vpop.permute.xlu0 %1220 }
 0x281   : > { %1236 = vrot.lane.b32.xlu0 %v746_v52, %s3159_s25  ;;  %1230 = vrot.lane.b32.xlu1 %v743_v13, %s3159_s25  ;;  %v823_v13 = vmul.f32 %v3983_v17, %v4979_v49  ;;  %v826_v52 = vmul.f32 %v3689_v51, %v3405_v27  ;;  %v4983_v51 = vld [vmem:[#allocation30_spill] sm:$0xff]  ;;  %v4069_v21 = vpop.permute.xlu1 %1094 }
 0x282   : > { %v903_v49 = vmul.f32 %v3983_v17, %v4983_v51 }
 0x284   : > { %v4043_v22 = vpop.permute.xlu0 %1280 }
 0x285   : > { %1296 = vrot.lane.b32.xlu0 %v824_v29, %s3160_s28  ;;  %1290 = vrot.lane.b32.xlu1 %v821_v4, %s3160_s28  ;;  %v4982_v29 = vld [vmem:[#allocation40_spill] sm:$0xff]  ;;  %v4081_v51 = vpop.permute.xlu1 %1154 }
 0x286   : > { %v904_v4 = vmul.f32 %v4037_v34, %v4982_v29  ;;  %v981_v29 = vmul.f32 %v4032_v14, %v4985_v42 }
 0x288   : > { %v4051_v15 = vpop.permute.xlu0 %1284 }
 0x289   : > { %1300 = vrot.lane.b32.xlu0 %v826_v52, %s3160_s28  ;;  %1294 = vrot.lane.b32.xlu1 %v823_v13, %s3160_s28  ;;  %v906_v52 = vmul.f32 %v4984_v38, %v3405_v27  ;;  %v4987_v38 = vld [vmem:[#allocation21_spill] sm:$0xff]  ;;  %v4091_v39 = vpop.xlane.xlu1 %1760 }
 0x28a   : > { %4989 = vst [vmem:[#allocation22_spill] sm:$0xff] %v4091_v39 }
 0x28c   : > { %v4061_v62 = vpop.permute.xlu0 %1344 }
 0x28d   : > { %1360 = vrot.lane.b32.xlu0 %v904_v4, %s3161_s29  ;;  %1354 = vrot.lane.b32.xlu1 %v901_v37, %s3161_s29  ;;  %v4986_v4 = vld [vmem:[#allocation41_spill] sm:$0xff]  ;;  %v4105_v39 = vpop.permute.xlu1 %1158 }
 0x28e   : > { %v984_v37 = vmul.f32 %v4037_v34, %v4986_v4  ;;  %v4990_v4 = vld [vmem:[#allocation23_spill] sm:$0xff] }
 0x290   : > { %v4071_v13 = vpop.permute.xlu0 %1348 }
 0x291   : > { %1364 = vrot.lane.b32.xlu0 %v906_v52, %s3161_s29  ;;  %1358 = vrot.lane.b32.xlu1 %v903_v49, %s3161_s29  ;;  %v983_v52 = vmul.f32 %v3983_v17, %v4987_v38  ;;  %v4988_v49 = vld [vmem:[#allocation47_spill] sm:$0xff]  ;;  %v4992_v38 = vld [vmem:[#allocation50_spill] sm:$0xff] }
 0x292   : > { %v986_v2 = vmul.f32 %v4988_v49, %v3405_v27  ;;  %v1066_v49 = vmul.f32 %v4992_v38, %v3405_v27 }
 0x294   : > { %v4079_v31 = vpop.permute.xlu0 %1408 }
 0x295   : > { %1424 = vrot.lane.b32.xlu0 %v984_v37, %s3162_s30  ;;  %1418 = vrot.lane.b32.xlu1 %v981_v29, %s3162_s30  ;;  %v1061_v37 = vmul.f32 %v4032_v14, %v4990_v4  ;;  %v4991_v29 = vld [vmem:[#allocation48_spill] sm:$0xff]  ;;  %v4115_v4 = vld [vmem:[%s3235_s26 + $0x60] sm:$0xff]  ;;  %v4998_v14 = vld [vmem:[#allocation6_spill] sm:$0xff] }
 0x296   : > { %v1064_v8 = vmul.f32 %v4037_v34, %v4991_v29  ;;  %v4995_v29 = vld [vmem:[#allocation49_spill] sm:$0xff]  ;;  %v4123_v34 = vpop.permute.xlu1 %1218 }
 0x297   : > { %v1063_v27 = vmul.f32 %v3983_v17, %v4995_v29  ;;  %v4139_v17 = vld [vmem:[%s3235_s26 + $0x48] sm:$0xff] }
 0x298   : > { %v4089_v42 = vpop.permute.xlu0 %1412  ;;  %v665_v36 = vmul.f32 %v4139_v17, %v5003_v20 }
 0x299   : > { %1428 = vrot.lane.b32.xlu0 %v986_v2, %s3162_s30  ;;  %1422 = vrot.lane.b32.xlu1 %v983_v52, %s3162_s30  ;;  %v4111_v52 = vld [vmem:[%s3235_s26 + $0x68] sm:$0xff] }
 0x29c   : > { %v4099_v56 = vpop.permute.xlu0 %1472 }
 0x29d   : > { %1488 = vrot.lane.b32.xlu0 %v1064_v8, %s3163_s11  ;;  %1482 = vrot.lane.b32.xlu1 %v1061_v37, %s3163_s11  ;;  %v4994_v8 = vld [vmem:[#allocation7_spill] sm:$0xff] }
 0x29e   : > { %v588_v37 = vmul.f32 %v4115_v4, %v4994_v8  ;;  %v4133_v8 = vld [vmem:[%s3235_s26 + $0x78] sm:$0xff] }
 0x2a0   : > { %v4107_v2 = vpop.permute.xlu0 %458 }
 0x2a1   : > { %4993 = vst [vmem:[#allocation24_spill] sm:$0xff] %v4107_v2  ;;  %1492 = vrot.lane.b32.xlu0 %v1066_v49, %s3163_s11  ;;  %483 = vperm.xlu1 %2929, %v4111_v52   ;;  %v590_v49 = vmul.f32 %v3747_v54, %v3501_v60 }
 0x2a4   : > { %v4121_v38 = vpop.permute.xlu0 %1476 }
 0x2a5   : > { %1112 = vrot.lane.b32.xlu0 %v588_v37, %s3156_s0  ;;  %1486 = vrot.lane.b32.xlu1 %v1063_v27, %s3163_s11  ;;  %v585_v37 = vmul.f32 %v4139_v17, %v4998_v14  ;;  %v668_v27 = vmul.f32 %v4115_v4, %v3751_v41 }
 0x2a8   : > { %v4129_v2 = vpop.permute.xlu0 %468 }
 0x2a9   : > { %4996 = vst [vmem:[#allocation16_spill] sm:$0xff] %v4129_v2  ;;  %1116 = vrot.lane.b32.xlu0 %v590_v49, %s3156_s0  ;;  %493 = vperm.xlu1 %2929, %v4133_v8   ;;  %v4136_v29 = vpop.xlane.xlu1 %1766  ;;  %v4152_v49 = vld [vmem:[%s3235_s26 + $0x58] sm:$0xff] }
 0x2aa   : > { %4997 = vst [vmem:[#allocation18_spill] sm:$0xff] %v4136_v29  ;;  %v5000_v2 = vld [vmem:[#allocation28_spill] sm:$0xff] }
 0x2ab   : > { %v587_v29 = vmul.f32 %v4152_v49, %v5000_v2  ;;  %v5005_v2 = vld [vmem:[#allocation12_spill] sm:$0xff] }
 0x2ac   : > { %v4145_v3 = vpop.permute.xlu0 %1096 }
 0x2ad   : > { %4999 = vst [vmem:[#allocation40_spill] sm:$0xff] %v4145_v3  ;;  %1176 = vrot.lane.b32.xlu0 %v668_v27, %s3158_s19  ;;  %1106 = vrot.lane.b32.xlu1 %v585_v37, %s3156_s0  ;;  %v4149_v54 = vpop.permute.xlu1 %423  ;;  %v5002_v27 = vld [vmem:[#allocation19_spill] sm:$0xff] }
 0x2ae   : > { %v748_v37 = vmul.f32 %v4115_v4, %v5002_v27  ;;  %v5008_v27 = vld [vmem:[#allocation17_spill] sm:$0xff] }
 0x2b0   : > { %v4158_v14 = vpop.permute.xlu0 %1100 }
 0x2b1   : > { %5001 = vst [vmem:[#allocation30_spill] sm:$0xff] %v4158_v14  ;;  %1180 = vrot.lane.b32.xlu0 %v670_v19, %s3158_s19  ;;  %1110 = vrot.lane.b32.xlu1 %v587_v29, %s3156_s0  ;;  %v429_v41 = vpop.permute.xlu1 %428  ;;  %v667_v19 = vmul.f32 %v4152_v49, %v5005_v2  ;;  %v750_v29 = vmul.f32 %v3784_v59, %v3501_v60 }
 0x2b2   : > { %v1768_v2 = vmul.f32 %v3888_v46, %v3888_v46 }
 0x2b4   : > { %v4166_v3 = vpop.permute.xlu0 %1160 }
 0x2b5   : > { %5004 = vst [vmem:[#allocation42_spill] sm:$0xff] %v4166_v3  ;;  %1240 = vrot.lane.b32.xlu0 %v748_v37, %s3159_s25  ;;  %1170 = vrot.lane.b32.xlu1 %v665_v36, %s3158_s19  ;;  %v4170_v23 = vpop.permute.xlu1 %433  ;;  %v745_v37 = vmul.f32 %v4139_v17, %v5008_v27  ;;  %v828_v36 = vmul.f32 %v4115_v4, %v3791_v26 }
 0x2b6   : > { %v830_v27 = vmul.f32 %v3801_v25, %v3501_v60  ;;  %v1769_v25 = vmul.f32 %v3749_v61, %v3749_v61 }
 0x2b8   : > { %v4176_v14 = vpop.permute.xlu0 %1164 }
 0x2b9   : > { %5006 = vst [vmem:[#allocation39_spill] sm:$0xff] %v4176_v14  ;;  %1244 = vrot.lane.b32.xlu0 %v750_v29, %s3159_s25  ;;  %1174 = vrot.lane.b32.xlu1 %v667_v19, %s3158_s19  ;;  %v4180_v20 = vpop.permute.xlu1 %443  ;;  %v5011_v19 = vld [vmem:[#allocation37_spill] sm:$0xff] }
 0x2ba   : > { %5007 = vst [vmem:[#allocation41_spill] sm:$0xff] %v4180_v20  ;;  %v747_v29 = vmul.f32 %v4152_v49, %v5011_v19  ;;  %v3119_v20 = vld [vmem:[%s3235_s26 + $0x10] sm:$0xff] }
 0x2bc   : > { %v4186_v3 = vpop.permute.xlu0 %1224 }
 0x2bd   : > { %5009 = vst [vmem:[#allocation21_spill] sm:$0xff] %v4186_v3  ;;  %1304 = vrot.lane.b32.xlu0 %v828_v36, %s3160_s28  ;;  %1234 = vrot.lane.b32.xlu1 %v745_v37, %s3159_s25  ;;  %v4190_v59 = vpop.permute.xlu1 %453  ;;  %v4204_v37 = vmul.f32 0.015625, %v1768_v2  ;;  %v5013_v36 = vld [vmem:[#allocation34_spill] sm:$0xff]  ;;  %v498_v3 = vmul.f32 %v3119_v20, %v429_v41  ;;  %v5017_v20 = vld [vmem:[#allocation32_spill] sm:$0xff] }
 0x2be   : > { %5010 = vst [vmem:[#allocation47_spill] sm:$0xff] %v4190_v59  ;;  %v908_v46 = vmul.f32 %v4115_v4, %v5013_v36  ;;  %v5014_v59 = vld [vmem:[#allocation38_spill] sm:$0xff]  ;;  %v3118_v36 = vld [vmem:[%s3235_s26] sm:$0xff] }
 0x2bf   : > { %v825_v19 = vmul.f32 %v4139_v17, %v5014_v59  ;;  %v1832_v59 = vmul.f32 %v4204_v37, %v4204_v37  ;;  %v496_v61 = vmul.f32 %v3118_v36, %v3999_v9  ;;  %v1802_v9 = vmul.f32 %v3770_v0, %v3770_v0  ;;  %v5018_v36 = vld [vmem:[#allocation44_spill] sm:$0xff] }
 0x2c0   : > { %v4198_v14 = vpop.permute.xlu0 %1228  ;;  %v988_v0 = vmul.f32 %v4115_v4, %v3834_v32 }
 0x2c1   : > { %5012 = vst [vmem:[#allocation23_spill] sm:$0xff] %v4198_v14  ;;  %1308 = vrot.lane.b32.xlu0 %v830_v27, %s3160_s28  ;;  %1238 = vrot.lane.b32.xlu1 %v747_v29, %s3159_s25  ;;  %v4202_v26 = vpop.permute.xlu1 %1222  ;;  %v1800_v14 = vmul.f32 %v3763_v24, %v3763_v24  ;;  %v1770_v29 = vmul.f32 %v3755_v57, %v3755_v57  ;;  %v5016_v24 = vld [vmem:[#allocation25_spill] sm:$0xff] }
 0x2c2   : > { %v910_v57 = vmul.f32 %v3826_v33, %v3501_v60 }
 0x2c3   : > { %v1816_v5 = vmul.f32 0.015625, %v1800_v14  ;;  %v4237_v40 = vmul.f32 0.015625, %v1770_v29  ;;  %v1523_v14 = vsel %vm1520_vm1, %v498_v3, %v3920_v45 }
 0x2c4   : > { %v4214_v27 = vpop.permute.xlu0 %1288  ;;  %v1540_v45 = vsel %vm1537_vm2, %v1523_v14, %v3965_v11  ;;  %v5019_v14 = vld [vmem:[#allocation53_spill] sm:$0xff] }
 0x2c5   : > { %5015 = vst [vmem:[#allocation48_spill] sm:$0xff] %v4214_v27  ;;  %1368 = vrot.lane.b32.xlu0 %v908_v46, %s3161_s29  ;;  %1298 = vrot.lane.b32.xlu1 %v825_v19, %s3160_s28  ;;  %v4220_v2 = vpop.permute.xlu1 %1282  ;;  %v827_v27 = vmul.f32 %v4152_v49, %v5016_v24  ;;  %v1801_v46 = vmul.f32 %v3915_v35, %v3915_v35  ;;  %v4233_v19 = vmul.f32 0.015625, %v1769_v25  ;;  %v1818_v24 = vmul.f32 0.015625, %v1802_v9 }
 0x2c6   : > { %v1848_v33 = vsub.f32 %v1816_v5, %v1832_v59  ;;  %v1521_v35 = vsel %vm1520_vm1, %v496_v61, %v3882_v7  ;;  %v905_v25 = vmul.f32 %v4139_v17, %v5017_v20  ;;  %v1771_v7 = vmul.f32 %v3898_v50, %v3898_v50 }
 0x2c7   : > { %v1817_v29 = vmul.f32 0.015625, %v1801_v46  ;;  %v1833_v5 = vmul.f32 %v4233_v19, %v4233_v19  ;;  %v1538_v3 = vsel %vm1537_vm2, %v1521_v35, %v3941_v47  ;;  %v1834_v61 = vmul.f32 %v4237_v40, %v4237_v40 }
 0x2c8   : > { %v4235_v10 = vpop.permute.xlu0 %1292  ;;  %v990_v50 = vmul.f32 %v3842_v55, %v3501_v60  ;;  %v1803_v47 = vmul.f32 %v3927_v63, %v3927_v63  ;;  %v1555_v11 = vsel %vm1554_vm3, %v1538_v3, %v3976_v6  ;;  %v497_v35 = vmul.f32 %v3932_v30, %v4149_v54  ;;  %v5020_v30 = vld [vmem:[#allocation46_spill] sm:$0xff]  ;;  %v4312_v3 = vld [vmem:[%s3235_s26 + $0x70] sm:$0xff] }
 0x2c9   : > { %1372 = vrot.lane.b32.xlu0 %v910_v57, %s3161_s29  ;;  %1302 = vrot.lane.b32.xlu1 %v827_v27, %s3160_s28  ;;  %v4243_v41 = vpop.permute.xlu1 %1286  ;;  %v907_v27 = vmul.f32 %v4152_v49, %v5018_v36  ;;  %v1864_v57 = vadd.f32 1e-05, %v1848_v33  ;;  %v1849_v46 = vsub.f32 %v1817_v29, %v1833_v5  ;;  %v1557_v9 = vsel %vm1554_vm3, %v1540_v45, %v4027_v44  ;;  %v5021_v5 = vld [vmem:[#allocation43_spill] sm:$0xff] }
 0x2ca   : > { %v1068_v60 = vmul.f32 %v4115_v4, %v5019_v14  ;;  %v4283_v55 = vmul.f32 0.015625, %v1771_v7  ;;  %v1572_v63 = vsel %vm1571_vm4, %v1555_v11, %v4043_v22  ;;  %v985_v44 = vmul.f32 %v4139_v17, %v5020_v30  ;;  %v5022_v11 = vld [vmem:[#allocation51_spill] sm:$0xff] }
 0x2cb   : > { %v1850_v54 = vsub.f32 %v1818_v24, %v1834_v61  ;;  %2947 = vrsqrt.f32 %v1864_v57  ;;  %v1589_v4 = vsel %vm1588_vm5, %v1572_v63, %v4061_v62  ;;  %v1865_v20 = vadd.f32 1e-05, %v1849_v46 }
 0x2cc   : > { %v4257_v59 = vpop.permute.xlu0 %1352  ;;  %v1606_v22 = vsel %vm1605_vm6, %v1589_v4, %v4079_v31  ;;  %v1522_v36 = vsel %vm1520_vm1, %v497_v35, %v3896_v48  ;;  %v1835_v62 = vmul.f32 %v4283_v55, %v4283_v55 }
 0x2cd   : > { %1432 = vrot.lane.b32.xlu0 %v988_v0, %s3162_s30  ;;  %1362 = vrot.lane.b32.xlu1 %v905_v25, %s3161_s29  ;;  %v1347_v32 = vpop.permute.xlu1 %1346  ;;  %v1819_v25 = vmul.f32 0.015625, %v1803_v47  ;;  %v1574_v0 = vsel %vm1571_vm4, %v1557_v9, %v4051_v15  ;;  %v1623_v29 = vsel %vm1622_vm7, %v1606_v22, %v4099_v56  ;;  %v987_v15 = vmul.f32 %v4152_v49, %v5021_v5 }
 0x2ce   : > { %v1866_v7 = vadd.f32 1e-05, %v1850_v54  ;;  %v1070_v56 = vmul.f32 %v4312_v3, %v3878_v1  ;;  %v1591_v48 = vsel %vm1588_vm5, %v1574_v0, %v4071_v13  ;;  %2949 = vrsqrt.f32 %v1865_v20 }
 0x2cf   : > { %v1851_v45 = vsub.f32 %v1819_v25, %v1835_v62  ;;  %v1640_v61 = vsel %vm1639_vm8, %v1623_v29, 0.0  ;;  %v1539_v24 = vsel %vm1537_vm2, %v1522_v36, %v4081_v51  ;;  %v1608_v1 = vsel %vm1605_vm6, %v1591_v48, %v4089_v42 }
 0x2d0   : > { %v4279_v33 = vpop.permute.xlu0 %1356  ;;  %v1896_v46 = vsub.f32 %v1640_v61, %v4204_v37  ;;  %v499_v13 = vmul.f32 %v3954_v43, %v4170_v23  ;;  %v1556_v47 = vsel %vm1554_vm3, %v1539_v24, %v4123_v34  ;;  %v1065_v51 = vmul.f32 %v4139_v17, %v5022_v11 }
 0x2d1   : > { %1436 = vrot.lane.b32.xlu0 %v990_v50, %s3162_s30  ;;  %1366 = vrot.lane.b32.xlu1 %v907_v27, %s3161_s29  ;;  %v4289_v6 = vpop.permute.xlu1 %1350  ;;  %2951 = vrsqrt.f32 %v1866_v7  ;;  %v1867_v35 = vadd.f32 1e-05, %v1851_v45  ;;  %v1573_v9 = vsel %vm1571_vm4, %v1556_v47, %v4220_v2  ;;  %v1625_v37 = vsel %vm1622_vm7, %v1608_v1, %v4121_v38  ;;  %v5023_v2 = vld [vmem:[#allocation52_spill] sm:$0xff] }
 0x2d2   : > { %v1524_v63 = vsel %vm1520_vm1, %v499_v13, %v4069_v21  ;;  %v1642_v54 = vsel %vm1639_vm8, %v1625_v37, 0.0  ;;  %v5025_v1 = vld [vmem:[#allocation8_spill] sm:$0xff] }
 0x2d3   : > { %2953 = vrsqrt.f32 %v1867_v35  ;;  %v1541_v25 = vsel %vm1537_vm2, %v1524_v63, %v4105_v39  ;;  %v1898_v62 = vsub.f32 %v1642_v54, %v4237_v40  ;;  %v4374_v39 = vld [vmem:[%s4876_s4] ss:$0 sm:$0xff]  ;;  %v5027_v63 = vld [vmem:[#allocation56_spill] sm:$0xff] }
 0x2d4   : > { %v4303_v27 = vpop.permute.xlu0 %1416  ;;  %v1558_v0 = vsel %vm1554_vm3, %v1541_v25, %v4202_v26  ;;  %v5028_v54 = vld [vmem:[#allocation57_spill] sm:$0xff]  ;;  %v5029_v25 = vld [vmem:[#allocation20_spill] sm:$0xff] }
 0x2d5   : > { %1496 = vrot.lane.b32.xlu0 %v1068_v60, %s3163_s11  ;;  %1426 = vrot.lane.b32.xlu1 %v985_v44, %s3162_s30  ;;  %v1411_v31 = vpop.permute.xlu1 %1410  ;;  %v2948_v14 = vpop.eup %2947  ;;  %v1590_v60 = vsel %vm1588_vm5, %v1573_v9, %v1347_v32  ;;  %v1067_v44 = vmul.f32 %v4152_v49, %v5023_v2  ;;  %v4351_v32 = vld [vmem:[%s4875_s3] ss:$0 sm:$0xff]  ;;  %v1575_v5 = vsel %vm1571_vm4, %v1558_v0, %v4243_v41 }
 0x2d6   : > { %v1607_v43 = vsel %vm1605_vm6, %v1590_v60, %v1411_v31  ;;  %v1912_v23 = vmul.f32 %v2948_v14, %v1896_v46  ;;  %v5024_v31 = vld [vmem:[#allocation54_spill] sm:$0xff]  ;;  %v751_v0 = vmul.f32 %v4133_v8, %v5029_v25 }
 0x2d7   : > { %v5026_v14 = vld [vmem:[#allocation14_spill] sm:$0xff] }
 0x2d8   : > { %v4321_v57 = vpop.permute.xlu0 %1420  ;;  %v2950_v21 = vpop.eup %2949  ;;  %v1935_v36 = vmul.f32 %v4351_v32, %v1912_v23  ;;  %v669_v60 = vmul.f32 %v4111_v52, %v5026_v14 }
 0x2d9   : > { %1500 = vrot.lane.b32.xlu0 %v1070_v56, %s3163_s11  ;;  %1430 = vrot.lane.b32.xlu1 %v987_v15, %s3162_s30  ;;  %v1415_v50 = vpop.permute.xlu1 %1414  ;;  %v1592_v15 = vsel %vm1588_vm5, %v1575_v5, %v4289_v6  ;;  %v591_v6 = vmul.f32 %v4133_v8, %v5025_v1  ;;  %v5032_v1 = vld [vmem:[#allocation58_spill] sm:$0xff] }
 0x2da   : > { %v1609_v40 = vsel %vm1605_vm6, %v1592_v15, %v1415_v50  ;;  %v1958_v45 = vadd.f32 %v4374_v39, %v1935_v36  ;;  %v1772_v15 = vmul.f32 %v3779_v53, %v3779_v53  ;;  %v1773_v53 = vmul.f32 %v3946_v16, %v3946_v16 }
 0x2db   : > { %v2952_v56 = vpop.eup %2951 }
 0x2dc   : > { %v4337_v42 = vpop.permute.xlu0 %1480  ;;  %v1914_v24 = vmul.f32 %v2952_v56, %v1898_v62  ;;  %v5030_v62 = vld [vmem:[#allocation26_spill] sm:$0xff] }
 0x2dd   : > { %1490 = vrot.lane.b32.xlu1 %v1065_v51, %s3163_s11  ;;  %v1475_v34 = vpop.permute.xlu1 %1474  ;;  %v2954_v11 = vpop.eup %2953 }
 0x2de   : > { %v1624_v30 = vsel %vm1622_vm7, %v1607_v43, %v1475_v34  ;;  %v1937_v9 = vmul.f32 %v4351_v32, %v1914_v24 }
 0x2df   : > { %v1641_v38 = vsel %vm1639_vm8, %v1624_v30, 0.0  ;;  %v671_v30 = vmul.f32 %v4133_v8, %v5027_v63  ;;  %v5036_v63 = vld [vmem:[#allocation45_spill] sm:$0xff] }
 0x2e0   : > { %v1897_v4 = vsub.f32 %v1641_v38, %v4233_v19  ;;  %v4356_v20 = vpop.permute.xlu0 %478  ;;  %v589_v19 = vmul.f32 %v4111_v52, %v5024_v31  ;;  %v1960_v34 = vadd.f32 %v4374_v39, %v1937_v9  ;;  %v829_v31 = vmul.f32 %v4111_v52, %v5030_v62 }
 0x2e1   : > { %1494 = vrot.lane.b32.xlu1 %v1067_v44, %s3163_s11  ;;  %v4361_v22 = vpop.permute.xlu1 %463 }
 0x2e2   : > { %v1913_v29 = vmul.f32 %v2950_v21, %v1897_v4  ;;  %v749_v4 = vmul.f32 %v4111_v52, %v5028_v54  ;;  %v5037_v54 = vld [vmem:[#allocation72_spill] sm:$0xff] }
 0x2e4   : > { %v4378_v26 = vpop.permute.xlu0 %1484  ;;  %v1936_v7 = vmul.f32 %v4351_v32, %v1913_v29 }
 0x2e5   : > { %1114 = vrot.lane.b32.xlu1 %v589_v19, %s3156_s0  ;;  %v1479_v48 = vpop.permute.xlu1 %1478 }
 0x2e6   : > { %v1626_v41 = vsel %vm1622_vm7, %v1609_v40, %v1479_v48  ;;  %v1959_v61 = vadd.f32 %v4374_v39, %v1936_v7  ;;  %v831_v7 = vmul.f32 %v4133_v8, %v3810_v18  ;;  %v4439_v40 = vmul.f32 0.015625, %v1772_v15  ;;  %v5031_v48 = vld [vmem:[#allocation59_spill] sm:$0xff] }
 0x2e7   : > { %v1643_v46 = vsel %vm1639_vm8, %v1626_v41, 0.0  ;;  %v1804_v41 = vmul.f32 %v5031_v48, %v5031_v48 }
 0x2e8   : > { %v1899_v13 = vsub.f32 %v1643_v46, %v4283_v55  ;;  %v4390_v47 = vpop.permute.xlu0 %488  ;;  %v1974_v50 = vpack.c.bf16 %v1959_v61, %v1958_v45  ;;  %v909_v45 = vmul.f32 %v4111_v52, %v3819_v12  ;;  %v1836_v24 = vmul.f32 %v4439_v40, %v4439_v40 }
 0x2e9   : > { %1118 = vrot.lane.b32.xlu1 %v591_v6, %s3156_s0  ;;  %v4393_v51 = vpop.permute.xlu1 %473  ;;  %v1774_v6 = vmul.f32 %v5032_v1, %v5032_v1  ;;  %v1820_v46 = vmul.f32 0.015625, %v1804_v41  ;;  %v1805_v12 = vmul.f32 %v3974_v58, %v3974_v58  ;;  %v989_v58 = vmul.f32 %v4111_v52, %v5036_v63 }
 0x2ea   : > { %v1915_v35 = vmul.f32 %v2954_v11, %v1899_v13  ;;  %2799 = vmatprep.mubr.bf16.mxu0 %v1974_v50  ;;  %v5033_v13 = vld [vmem:[#allocation36_spill] sm:$0xff]  ;;  %v4460_v11 = vmul.f32 0.015625, %v1773_v53 }
 0x2eb   : > { %v911_v50 = vmul.f32 %v4133_v8, %v5033_v13  ;;  %v4467_v9 = vmul.f32 0.015625, %v1774_v6  ;;  %v1852_v14 = vsub.f32 %v1820_v46, %v1836_v24  ;;  %v5041_v24 = vld [vmem:[#allocation42_spill] sm:$0xff]  ;;  %v5042_v46 = vld [vmem:[#allocation21_spill] sm:$0xff] }
 0x2ec   : > { %v1938_v37 = vmul.f32 %v4351_v32, %v1915_v35  ;;  %v4399_v43 = vpop.permute.xlu0 %1104 }
 0x2ed   : > { %1178 = vrot.lane.b32.xlu1 %v669_v60, %s3158_s19  ;;  %v4402_v55 = vpop.permute.xlu1 %1098  ;;  %v1806_v60 = vmul.f32 %v3806_v28, %v3806_v28  ;;  %v1868_v28 = vadd.f32 1e-05, %v1852_v14 }
 0x2ee   : > { %v1961_v23 = vadd.f32 %v4374_v39, %v1938_v37  ;;  %v5034_v37 = vld [vmem:[#allocation10_spill] sm:$0xff] }
 0x2ef   : > { %v1822_v62 = vmul.f32 0.015625, %v1806_v60  ;;  %2955 = vrsqrt.f32 %v1868_v28 }
 0x2f0   : > { %v1975_v2 = vpack.c.bf16 %v1961_v23, %v1960_v34  ;;  %v4408_v44 = vpop.permute.xlu0 %1108  ;;  %v5035_v34 = vld [vmem:[#allocation70_spill] sm:$0xff] }
 0x2f1   : > { %1182 = vrot.lane.b32.xlu1 %v671_v30, %s3158_s19  ;;  %v4411_v38 = vpop.permute.xlu1 %1102  ;;  %v500_v23 = vmul.f32 %v5035_v34, %v5034_v37  ;;  %v1821_v30 = vmul.f32 0.015625, %v1805_v12  ;;  %v5043_v12 = vld [vmem:[#allocation48_spill] sm:$0xff]  ;;  %v3121_v34 = vld [vmem:[%s3235_s26 + $0x30] sm:$0xff] }
 0x2f2   : > { %2800 = vmatmul.mubr.bf16.vlgmr.msra.gmra.mrb[0].mxu0 %v1975_v2  ;;  %v1837_v2 = vmul.f32 %v4460_v11, %v4460_v11 }
 0x2f4   : > { %v4420_v29 = vpop.permute.xlu0 %1168  ;;  %v1853_v41 = vsub.f32 %v1821_v30, %v1837_v2  ;;  %v5045_v30 = vld [vmem:[#allocation67_spill] sm:$0xff] }
 0x2f5   : > { %1242 = vrot.lane.b32.xlu1 %v749_v4, %s3159_s25  ;;  %v4416_v21 = vpop.permute.xlu1 %1162  ;;  %v1775_v4 = vmul.f32 %v5037_v54, %v5037_v54  ;;  %v1069_v2 = vmul.f32 %v4111_v52, %v5045_v30 }
 0x2f6   : > { %v1869_v54 = vadd.f32 1e-05, %v1853_v41 }
 0x2f8   : > { %v4427_v19 = vpop.permute.xlu0 %1172  ;;  %2957 = vrsqrt.f32 %v1869_v54 }
 0x2f9   : > { %1246 = vrot.lane.b32.xlu1 %v751_v0, %s3159_s25  ;;  %v4423_v36 = vpop.permute.xlu1 %1166  ;;  %v1838_v0 = vmul.f32 %v4467_v9, %v4467_v9 }
 0x2fb   : > { %v1854_v37 = vsub.f32 %v1822_v62, %v1838_v0 }
 0x2fc   : > { %v4445_v61 = vpop.permute.xlu0 %1232 }
 0x2fd   : > { %1306 = vrot.lane.b32.xlu1 %v829_v31, %s3160_s28  ;;  %v4430_v5 = vpop.permute.xlu1 %1226  ;;  %v5038_v31 = vld [vmem:[#allocation40_spill] sm:$0xff]  ;;  %v1870_v52 = vadd.f32 1e-05, %v1854_v37 }
 0x2fe   : > { %v1525_v15 = vsel %vm1520_vm1, %v500_v23, %v5038_v31  ;;  %v5044_v23 = vld [vmem:[#allocation11_spill] sm:$0xff] }
 0x2ff   : > { %v1542_v1 = vsel %vm1537_vm2, %v1525_v15, %v5041_v24  ;;  %v502_v63 = vmul.f32 %v3121_v34, %v5044_v23  ;;  %v5050_v24 = vld [vmem:[#allocation39_spill] sm:$0xff]  ;;  %2959 = vrsqrt.f32 %v1870_v52 }
 0x300   : > { %v4462_v16 = vpop.permute.xlu0 %1236  ;;  %v1559_v13 = vsel %vm1554_vm3, %v1542_v1, %v5042_v46 }
 0x301   : > { %1310 = vrot.lane.b32.xlu1 %v831_v7, %s3160_s28  ;;  %v4437_v56 = vpop.permute.xlu1 %1230  ;;  %v5039_v7 = vld [vmem:[#allocation65_spill] sm:$0xff]  ;;  %v1576_v14 = vsel %vm1571_vm4, %v1559_v13, %v5043_v12  ;;  %v5051_v13 = vld [vmem:[#allocation23_spill] sm:$0xff] }
 0x302   : > { %v991_v48 = vmul.f32 %v4133_v8, %v5039_v7 }
 0x304   : > { %v4490_v6 = vpop.permute.xlu0 %1296 }
 0x305   : > { %1370 = vrot.lane.b32.xlu1 %v909_v45, %s3161_s29  ;;  %v4450_v18 = vpop.permute.xlu1 %1290  ;;  %v5040_v45 = vld [vmem:[#allocation27_spill] sm:$0xff] }
 0x306   : > { %v1807_v53 = vmul.f32 %v5040_v45, %v5040_v45  ;;  %v5048_v45 = vld [vmem:[#allocation41_spill] sm:$0xff] }
 0x308   : > { %v4511_v28 = vpop.permute.xlu0 %1300 }
 0x309   : > { %1374 = vrot.lane.b32.xlu1 %v911_v50, %s3161_s29  ;;  %v4465_v35 = vpop.permute.xlu1 %1294  ;;  %v4494_v50 = vmul.f32 0.015625, %v1775_v4  ;;  %v1823_v4 = vmul.f32 0.015625, %v1807_v53 }
 0x30b   : > { %v1839_v0 = vmul.f32 %v4494_v50, %v4494_v50 }
 0x30d   : > { %1434 = vrot.lane.b32.xlu1 %v989_v58, %s3162_s30  ;;  %v1355_v25 = vpop.permute.xlu1 %1354  ;;  %v1593_v58 = vsel %vm1588_vm5, %v1576_v14, %v4257_v59  ;;  %v5046_v59 = vld [vmem:[#allocation55_spill] sm:$0xff] }
 0x30e   : > { %v1610_v31 = vsel %vm1605_vm6, %v1593_v58, %v4303_v27  ;;  %v1071_v7 = vmul.f32 %v4133_v8, %v5046_v59  ;;  %v5049_v27 = vld [vmem:[#allocation13_spill] sm:$0xff] }
 0x30f   : > { %v1627_v15 = vsel %vm1622_vm7, %v1610_v31, %v4337_v42  ;;  %v501_v53 = vmul.f32 %v5049_v27, %v5048_v45  ;;  %v1855_v42 = vsub.f32 %v1823_v4, %v1839_v0  ;;  %v5053_v31 = vld [vmem:[#allocation73_spill] sm:$0xff] }
 0x310   : > { %v1644_v46 = vsel %vm1639_vm8, %v1627_v15, 0.0 }
 0x311   : > { %1438 = vrot.lane.b32.xlu1 %v991_v48, %s3162_s30  ;;  %v1359_v60 = vpop.permute.xlu1 %1358  ;;  %v5047_v48 = vld [vmem:[#allocation30_spill] sm:$0xff]  ;;  %v1526_v8 = vsel %vm1520_vm1, %v501_v53, %v4402_v55  ;;  %v1871_v30 = vadd.f32 1e-05, %v1855_v42 }
 0x312   : > { %v1527_v41 = vsel %vm1520_vm1, %v502_v63, %v5047_v48  ;;  %v1543_v37 = vsel %vm1537_vm2, %v1526_v8, %v4416_v21  ;;  %v1900_v63 = vsub.f32 %v1644_v46, %v4439_v40  ;;  %v4541_v21 = vpop.permute.xlu0 %1360 }
 0x313   : > { %v1544_v1 = vsel %vm1537_vm2, %v1527_v41, %v5050_v24  ;;  %v1560_v58 = vsel %vm1554_vm3, %v1543_v37, %v4430_v5  ;;  %v5052_v5 = vld [vmem:[#allocation47_spill] sm:$0xff]  ;;  %2961 = vrsqrt.f32 %v1871_v30 }
 0x314   : > { %v1561_v12 = vsel %vm1554_vm3, %v1544_v1, %v5051_v13  ;;  %v503_v15 = vmul.f32 %v5053_v31, %v5052_v5  ;;  %v5054_v31 = vld [vmem:[#allocation9_spill] sm:$0xff] }
 0x315   : > { %1498 = vrot.lane.b32.xlu1 %v1069_v2, %s3163_s11  ;;  %v1419_v62 = vpop.permute.xlu1 %1418  ;;  %v1578_v14 = vsel %vm1571_vm4, %v1561_v12, %v4235_v10  ;;  %v1577_v10 = vsel %vm1571_vm4, %v1560_v58, %v4450_v18  ;;  %v2956_v2 = vpop.eup %2955 }
 0x316   : > { %v1595_v23 = vsel %vm1588_vm5, %v1578_v14, %v4279_v33  ;;  %v1594_v33 = vsel %vm1588_vm5, %v1577_v10, %v1355_v25  ;;  %v1916_v0 = vmul.f32 %v2956_v2, %v1900_v63  ;;  %v2958_v25 = vpop.eup %2957  ;;  %v4557_v52 = vpop.permute.xlu0 %1364 }
 0x317   : > { %v1612_v55 = vsel %vm1605_vm6, %v1595_v23, %v4321_v57  ;;  %v1611_v40 = vsel %vm1605_vm6, %v1594_v33, %v1419_v62 }
 0x318   : > { %v1629_v54 = vsel %vm1622_vm7, %v1612_v55, %v4378_v26  ;;  %v1939_v41 = vmul.f32 %v4351_v32, %v1916_v0 }
 0x319   : > { %1502 = vrot.lane.b32.xlu1 %v1071_v7, %s3163_s11  ;;  %v1423_v34 = vpop.permute.xlu1 %1422  ;;  %v1646_v18 = vsel %vm1639_vm8, %v1629_v54, 0.0  ;;  %v1528_v7 = vsel %vm1520_vm1, %v503_v15, %v4411_v38  ;;  %v1776_v15 = vmul.f32 %v5054_v31, %v5054_v31  ;;  %v5062_v31 = vld [vmem:[#allocation33_spill] sm:$0xff] }
 0x31a   : > { %v1545_v62 = vsel %vm1537_vm2, %v1528_v7, %v4423_v36  ;;  %v1902_v45 = vsub.f32 %v1646_v18, %v4467_v9  ;;  %v2960_v36 = vpop.eup %2959  ;;  %v1962_v9 = vadd.f32 %v4374_v39, %v1939_v41  ;;  %v5055_v18 = vld [vmem:[#allocation60_spill] sm:$0xff]  ;;  %v5056_v7 = vld [vmem:[#allocation61_spill] sm:$0xff] }
 0x31b   : > { %v1562_v27 = vsel %vm1554_vm3, %v1545_v62, %v4437_v56  ;;  %v4573_v56 = vpop.permute.xlu0 %1424  ;;  %v5057_v62 = vld [vmem:[#allocation62_spill] sm:$0xff] }
 0x31c   : > { %v1579_v38 = vsel %vm1571_vm4, %v1562_v27, %v4465_v35  ;;  %v1918_v46 = vmul.f32 %v2960_v36, %v1902_v45  ;;  %v1808_v41 = vmul.f32 %v5057_v62, %v5057_v62  ;;  %v5059_v36 = vld [vmem:[#allocation64_spill] sm:$0xff] }
 0x31d   : > { %v1483_v4 = vpop.permute.xlu1 %1482  ;;  %v2962_v14 = vpop.eup %2961 }
 0x31e   : > { %v1628_v57 = vsel %vm1622_vm7, %v1611_v40, %v1483_v4 }
 0x31f   : > { %v1645_v59 = vsel %vm1639_vm8, %v1628_v57, 0.0  ;;  %v4581_v58 = vpop.permute.xlu0 %1428 }
 0x320   : > { %v1901_v26 = vsub.f32 %v1645_v59, %v4460_v11  ;;  %v1596_v11 = vsel %vm1588_vm5, %v1579_v38, %v1359_v60  ;;  %v1777_v59 = vmul.f32 %v5055_v18, %v5055_v18  ;;  %v5063_v18 = vld [vmem:[#allocation66_spill] sm:$0xff] }
 0x321   : > { %v4559_v48 = vpop.permute.xlu1 %483  ;;  %v1613_v24 = vsel %vm1605_vm6, %v1596_v11, %v1423_v34  ;;  %v1941_v34 = vmul.f32 %v4351_v32, %v1918_v46  ;;  %v5058_v11 = vld [vmem:[#allocation63_spill] sm:$0xff] }
 0x322   : > { %v1917_v53 = vmul.f32 %v2958_v25, %v1901_v26  ;;  %v1778_v26 = vmul.f32 %v5056_v7, %v5056_v7  ;;  %v4609_v25 = vmul.f32 0.015625, %v1776_v15 }
 0x323   : > { %v1964_v55 = vadd.f32 %v4374_v39, %v1941_v34  ;;  %v4589_v54 = vpop.permute.xlu0 %1488 }
 0x324   : > { %v1940_v42 = vmul.f32 %v4351_v32, %v1917_v53  ;;  %v4617_v53 = vmul.f32 0.015625, %v1777_v59  ;;  %v4619_v38 = vmul.f32 0.015625, %v1778_v26  ;;  %v1840_v46 = vmul.f32 %v4609_v25, %v4609_v25 }
 0x325   : > { %v1487_v1 = vpop.permute.xlu1 %1486  ;;  %v1811_v59 = vmul.f32 %v5063_v18, %v5063_v18  ;;  %v505_v18 = vmul.f32 %v4139_v17, %v4361_v22 }
 0x326   : > { %v1630_v13 = vsel %vm1622_vm7, %v1613_v24, %v1487_v1  ;;  %v1963_v12 = vadd.f32 %v4374_v39, %v1940_v42  ;;  %v1809_v42 = vmul.f32 %v5058_v11, %v5058_v11  ;;  %v1810_v24 = vmul.f32 %v5059_v36, %v5059_v36  ;;  %v2939_v1 = vld [vmem:[%s3247_s15] sm:$0xff]   ;;  %v2941_v11 = vld [vmem:[%s3247_s15 + $0x10] sm:$0xff]  }
 0x327   : > { %v1647_v8 = vsel %vm1639_vm8, %v1630_v13, 0.0  ;;  %v4593_v40 = vpop.permute.xlu0 %1492  ;;  %v5060_v13 = vld [vmem:[#allocation31_spill] sm:$0xff]  ;;  %2815 = vmatprep.subr.bf16.mxu1 %v2939_v1 }
 0x328   : > { %v1903_v35 = vsub.f32 %v1647_v8, %v4494_v50  ;;  %v1976_v60 = vpack.c.bf16 %v1963_v12, %v1962_v9  ;;  %v1779_v9 = vmul.f32 %v5060_v13, %v5060_v13  ;;  %v1824_v12 = vmul.f32 0.015625, %v1808_v41  ;;  %2816 = vmatpush3.bf16.msra.mxu1 %v2939_v1  ;;  %v3122_v1 = vld [vmem:[%s3235_s26 + $0x50] sm:$0xff] }
 0x329   : > { %v4577_v37 = vpop.permute.xlu1 %493  ;;  %v1826_v34 = vmul.f32 0.015625, %v1810_v24 }
 0x32a   : > { %v1919_v23 = vmul.f32 %v2962_v14, %v1903_v35  ;;  %2803 = vmatprep.mubr.bf16.mxu0 %v1976_v60  ;;  %v1841_v35 = vmul.f32 %v4617_v53, %v4617_v53  ;;  %v1842_v60 = vmul.f32 %v4619_v38, %v4619_v38  ;;  %v1825_v14 = vmul.f32 0.015625, %v1809_v42 }
 0x32b   : > { %v4601_v0 = vpop.permute.xlu0 %1112 }
 0x32c   : > { %v1942_v63 = vmul.f32 %v4351_v32, %v1919_v23  ;;  %v2940_v23 = vld [vmem:[%s3247_s15 + $0x8] sm:$0xff]   ;;  %v1857_v26 = vsub.f32 %v1825_v14, %v1841_v35  ;;  %v1858_v62 = vsub.f32 %v1826_v34, %v1842_v60 }
 0x32d   : > { %v4583_v30 = vpop.permute.xlu1 %1106  ;;  %2817 = vmatprep.subr.bf16.mxu1 %v2940_v23 }
 0x32e   : > { %v1965_v10 = vadd.f32 %v4374_v39, %v1942_v63  ;;  %v1856_v63 = vsub.f32 %v1824_v12, %v1840_v46  ;;  %2818 = vmatpush3.bf16.msra.mxu1 %v2940_v23  ;;  %v5064_v46 = vld [vmem:[#allocation16_spill] sm:$0xff]  ;;  %v1827_v12 = vmul.f32 0.015625, %v1811_v59  ;;  %v1873_v14 = vadd.f32 1e-05, %v1857_v26 }
 0x32f   : > { %v4613_v45 = vpop.permute.xlu0 %1116  ;;  %v506_v13 = vmul.f32 %v3122_v1, %v5064_v46  ;;  %2819 = vmatprep.subr.bf16.mxu1 %v2941_v11  ;;  %v1874_v34 = vadd.f32 1e-05, %v1858_v62  ;;  %v1530_v17 = vsel %vm1520_vm1, %v505_v18, %v4583_v30  ;;  %v507_v62 = vmul.f32 %v4152_v49, %v4393_v51 }
 0x330   : > { %v1977_v2 = vpack.c.bf16 %v1965_v10, %v1964_v55  ;;  %v4637_v55 = vmul.f32 0.015625, %v1779_v9  ;;  %v1872_v42 = vadd.f32 1e-05, %v1856_v63  ;;  %v2942_v63 = vld [vmem:[%s3247_s15 + $0x18] sm:$0xff]  }
 0x331   : > { %v4587_v50 = vpop.permute.xlu1 %1110 }
 0x332   : > { %2804 = vmatmul.mubr.bf16.gmra.mrb[4].mxu0 %v1977_v2  ;;  %v5061_v2 = vld [vmem:[#allocation24_spill] sm:$0xff]  ;;  %v1843_v36 = vmul.f32 %v4637_v55, %v4637_v55  ;;  %2820 = vmatpush3.bf16.msra.mxu1 %v2941_v11  ;;  %2963 = vrsqrt.f32 %v1872_v42  ;;  %v2944_v11 = vld [vmem:[%s3247_s15 + $0x28] sm:$0xff]  }
 0x333   : > { %v4639_v10 = vpop.permute.xlu0 %1176  ;;  %v504_v15 = vmul.f32 %v5062_v31, %v5061_v2  ;;  %2821 = vmatprep.subr.bf16.mxu1 %v2942_v63  ;;  %2965 = vrsqrt.f32 %v1873_v14 }
 0x334   : > { %2967 = vrsqrt.f32 %v1874_v34 }
 0x335   : > { %v4591_v33 = vpop.permute.xlu1 %1170  ;;  %v1529_v41 = vsel %vm1520_vm1, %v504_v15, %v4399_v43 }
 0x336   : > { %v1546_v24 = vsel %vm1537_vm2, %v1529_v41, %v4420_v29  ;;  %v1531_v29 = vsel %vm1520_vm1, %v506_v13, %v4408_v44  ;;  %2822 = vmatpush3.bf16.msra.mxu1 %v2942_v63  ;;  %v1547_v22 = vsel %vm1537_vm2, %v1530_v17, %v4591_v33  ;;  %v1532_v33 = vsel %vm1520_vm1, %v507_v62, %v4587_v50 }
 0x337   : > { %v1563_v9 = vsel %vm1554_vm3, %v1546_v24, %v4445_v61  ;;  %v4658_v35 = vpop.permute.xlu0 %1180  ;;  %v1859_v61 = vsub.f32 %v1827_v12, %v1843_v36  ;;  %v1548_v2 = vsel %vm1537_vm2, %v1531_v29, %v4427_v19 }
 0x338   : > { %v1580_v43 = vsel %vm1571_vm4, %v1563_v9, %v4490_v6  ;;  %v1565_v31 = vsel %vm1554_vm3, %v1548_v2, %v4462_v16 }
 0x339   : > { %v4595_v4 = vpop.permute.xlu1 %1174  ;;  %v1597_v23 = vsel %vm1588_vm5, %v1580_v43, %v4541_v21  ;;  %v1582_v44 = vsel %vm1571_vm4, %v1565_v31, %v4511_v28  ;;  %v1875_v16 = vadd.f32 1e-05, %v1859_v61 }
 0x33a   : > { %v1614_v6 = vsel %vm1605_vm6, %v1597_v23, %v4573_v56  ;;  %v1599_v19 = vsel %vm1588_vm5, %v1582_v44, %v4557_v52  ;;  %v2943_v56 = vld [vmem:[%s3247_s15 + $0x20] sm:$0xff]  }
 0x33b   : > { %v1631_v15 = vsel %vm1622_vm7, %v1614_v6, %v4589_v54  ;;  %v1616_v54 = vsel %vm1605_vm6, %v1599_v19, %v4581_v58  ;;  %v4683_v26 = vpop.permute.xlu0 %1240  ;;  %2823 = vmatprep.subr.bf16.mxu1 %v2943_v56  ;;  %2969 = vrsqrt.f32 %v1875_v16 }
 0x33c   : > { %v1648_v59 = vsel %vm1639_vm8, %v1631_v15, 0.0  ;;  %v1633_v28 = vsel %vm1622_vm7, %v1616_v54, %v4593_v40  ;;  %2824 = vmatpush3.bf16.msra.mxu1 %v2943_v56  ;;  %v2964_v49 = vpop.eup %2963 }
 0x33d   : > { %v4597_v5 = vpop.permute.xlu1 %1234  ;;  %v1904_v58 = vsub.f32 %v1648_v59, %v4609_v25  ;;  %v1650_v40 = vsel %vm1639_vm8, %v1633_v28, 0.0  ;;  %2825 = vmatprep.subr.bf16.mxu1 %v2944_v11 }
 0x33e   : > { %v1564_v41 = vsel %vm1554_vm3, %v1547_v22, %v4597_v5  ;;  %v1549_v5 = vsel %vm1537_vm2, %v1532_v33, %v4595_v4  ;;  %v1906_v1 = vsub.f32 %v1650_v40, %v4619_v38  ;;  %v2966_v4 = vpop.eup %2965  ;;  %v5066_v40 = vld [vmem:[#allocation71_spill] sm:$0xff] }
 0x33f   : > { %v4703_v51 = vpop.permute.xlu0 %1244  ;;  %v1920_v24 = vmul.f32 %v2964_v49, %v1904_v58  ;;  %v2968_v43 = vpop.eup %2967  ;;  %v5065_v58 = vld [vmem:[#allocation68_spill] sm:$0xff]  ;;  %v5067_v49 = vld [vmem:[#allocation69_spill] sm:$0xff] }
 0x340   : > { %2826 = vmatpush3.bf16.msra.mxu1 %v2944_v11  ;;  %v1922_v34 = vmul.f32 %v2968_v43, %v1906_v1 }
 0x341   : > { %v4603_v57 = vpop.permute.xlu1 %1238 }
 0x342   : > { %v1945_v31 = vmul.f32 %v4351_v32, %v1922_v34 }
 0x343   : > { %v4722_v63 = vpop.permute.xlu0 %1304 }
 0x345   : > { %v4615_v27 = vpop.permute.xlu1 %1298  ;;  %v2970_v2 = vpop.eup %2969 }
 0x346   : > { %v1581_v30 = vsel %vm1571_vm4, %v1564_v41, %v4615_v27  ;;  %v1566_v27 = vsel %vm1554_vm3, %v1549_v5, %v4603_v57  ;;  %v1943_v57 = vmul.f32 %v4351_v32, %v1920_v24  ;;  %v1780_v41 = vmul.f32 %v5065_v58, %v5065_v58 }
 0x347   : > { %v1309_v56 = vpop.permute.xlu0 %1308  ;;  %v1782_v5 = vmul.f32 %v5067_v49, %v5067_v49 }
 0x348   : > { %v1966_v44 = vadd.f32 %v4374_v39, %v1943_v57 }
 0x349   : > { %v4630_v8 = vpop.permute.xlu1 %1302 }
 0x34a   : > { %v1583_v46 = vsel %vm1571_vm4, %v1566_v27, %v4630_v8  ;;  %v2946_v8 = vld [vmem:[%s3247_s15 + $0x38] sm:$0xff]   ;;  %v5069_v27 = vld [vmem:[#allocation5_spill] sm:$0xff] }
 0x34b   : > { %v1369_v17 = vpop.permute.xlu0 %1368 }
 0x34d   : > { %v1363_v7 = vpop.permute.xlu1 %1362 }
 0x34e   : > { %v1598_v42 = vsel %vm1588_vm5, %v1581_v30, %v1363_v7  ;;  %v2945_v7 = vld [vmem:[%s3247_s15 + $0x30] sm:$0xff]   ;;  %v1812_v30 = vmul.f32 %v5066_v40, %v5066_v40 }
 0x34f   : > { %2827 = vmatprep.subr.bf16.mxu1 %v2945_v7 }
 0x350   : > { %2828 = vmatpush3.bf16.msra.mxu1 %v2945_v7  ;;  %v1828_v1 = vmul.f32 0.015625, %v1812_v30  ;;  %v5070_v7 = vld [vmem:[#allocation22_spill] sm:$0xff] }
 0x351   : > { %v1367_v60 = vpop.permute.xlu1 %1366  ;;  %2829 = vmatprep.subr.bf16.mxu1 %v2946_v8 }
 0x352   : > { %v1600_v9 = vsel %vm1588_vm5, %v1583_v46, %v1367_v60  ;;  %v1813_v46 = vmul.f32 %v5070_v7, %v5070_v7 }
 0x354   : > { %2830 = vmatpush3.bf16.msra.mxu1 %v2946_v8 }
 0x355   : > { %v1427_v21 = vpop.permute.xlu1 %1426 }
 0x356   : > { %v1615_v25 = vsel %vm1605_vm6, %v1598_v42, %v1427_v21  ;;  %v4749_v42 = vmul.f32 0.015625, %v1780_v41 }
 0x359   : > { %v1431_v52 = vpop.permute.xlu1 %1430 }
 0x35a   : > { %v1617_v38 = vsel %vm1605_vm6, %v1600_v9, %v1431_v52  ;;  %v1373_v52 = vpop.permute.xlu0 %1372 }
 0x35d   : > { %v1491_v36 = vpop.permute.xlu1 %1490 }
 0x35e   : > { %v1632_v50 = vsel %vm1622_vm7, %v1615_v25, %v1491_v36  ;;  %v1433_v33 = vpop.permute.xlu0 %1432  ;;  %v5068_v25 = vld [vmem:[#allocation15_spill] sm:$0xff] }
 0x35f   : > { %v1649_v13 = vsel %vm1639_vm8, %v1632_v50, 0.0  ;;  %v1781_v36 = vmul.f32 %v5068_v25, %v5068_v25  ;;  %v1814_v50 = vmul.f32 %v5069_v27, %v5069_v27 }
 0x360   : > { %v1905_v12 = vsub.f32 %v1649_v13, %v4617_v53  ;;  %v1844_v13 = vmul.f32 %v4749_v42, %v4749_v42 }
 0x361   : > { %v1495_v14 = vpop.permute.xlu1 %1494  ;;  %v4765_v9 = vmul.f32 0.015625, %v1781_v36  ;;  %v1830_v34 = vmul.f32 0.015625, %v1814_v50 }
 0x362   : > { %v1921_v29 = vmul.f32 %v2966_v4, %v1905_v12  ;;  %v1634_v23 = vsel %vm1622_vm7, %v1617_v38, %v1495_v14  ;;  %v4763_v4 = vmul.f32 0.015625, %v1782_v5  ;;  %v5071_v12 = vld [vmem:[#allocation35_spill] sm:$0xff]  ;;  %v1437_v38 = vpop.permute.xlu0 %1436  ;;  %v1860_v57 = vsub.f32 %v1828_v1, %v1844_v13 }
 0x363   : > { %v1651_v61 = vsel %vm1639_vm8, %v1634_v23, 0.0  ;;  %v1783_v43 = vmul.f32 %v5071_v12, %v5071_v12  ;;  %v5072_v23 = vld [vmem:[#allocation18_spill] sm:$0xff]  ;;  %v3125_v12 = vld [vmem:[%s3235_s26 + $0x78] sm:$0xff] }
 0x364   : > { %v1944_v60 = vmul.f32 %v4351_v32, %v1921_v29  ;;  %v1907_v53 = vsub.f32 %v1651_v61, %v4637_v55  ;;  %v1968_v55 = vadd.f32 %v4374_v39, %v1945_v31  ;;  %v1829_v29 = vmul.f32 0.015625, %v1813_v46 }
 0x365   : > { %v4727_v6 = vpop.permute.xlu1 %1114  ;;  %v1815_v8 = vmul.f32 %v5072_v23, %v5072_v23  ;;  %v1846_v61 = vmul.f32 %v4763_v4, %v4763_v4  ;;  %v4779_v31 = vmul.f32 0.015625, %v1783_v43 }
 0x366   : > { %v1923_v15 = vmul.f32 %v2970_v2, %v1907_v53  ;;  %v1967_v21 = vadd.f32 %v4374_v39, %v1944_v60  ;;  %v3123_v60 = vld [vmem:[%s3235_s26 + $0x60] sm:$0xff]  ;;  %v1845_v2 = vmul.f32 %v4765_v9, %v4765_v9 }
 0x367   : > { %v508_v53 = vmul.f32 %v3123_v60, %v4356_v20  ;;  %v510_v20 = vmul.f32 %v4312_v3, %v4390_v47  ;;  %v1847_v41 = vmul.f32 %v4779_v31, %v4779_v31 }
 0x368   : > { %v1946_v18 = vmul.f32 %v4351_v32, %v1923_v15  ;;  %v1978_v19 = vpack.c.bf16 %v1967_v21, %v1966_v44  ;;  %v1876_v44 = vadd.f32 1e-05, %v1860_v57  ;;  %v1862_v21 = vsub.f32 %v1830_v34, %v1846_v61 }
 0x369   : > { %v4733_v16 = vpop.permute.xlu1 %1118 }
 0x36a   : > { %2807 = vmatprep.mubr.bf16.mxu0 %v1978_v19  ;;  %v1969_v54 = vadd.f32 %v4374_v39, %v1946_v18  ;;  %v1533_v18 = vsel %vm1520_vm1, %v508_v53, %v4601_v0  ;;  %v1861_v19 = vsub.f32 %v1829_v29, %v1845_v2  ;;  %2971 = vrsqrt.f32 %v1876_v44 }
 0x36b   : > { %v1878_v30 = vadd.f32 1e-05, %v1862_v21 }
 0x36c   : > { %v1979_v59 = vpack.c.bf16 %v1969_v54, %v1968_v55  ;;  %v1831_v55 = vmul.f32 0.015625, %v1815_v8  ;;  %v1550_v54 = vsel %vm1537_vm2, %v1533_v18, %v4639_v10  ;;  %v1535_v10 = vsel %vm1520_vm1, %v510_v20, %v4613_v45  ;;  %v3124_v45 = vld [vmem:[%s3235_s26 + $0x68] sm:$0xff] }
 0x36d   : > { %v4737_v28 = vpop.permute.xlu1 %1178  ;;  %v1567_v58 = vsel %vm1554_vm3, %v1550_v54, %v4683_v26  ;;  %v1877_v5 = vadd.f32 1e-05, %v1861_v19  ;;  %v1552_v47 = vsel %vm1537_vm2, %v1535_v10, %v4658_v35  ;;  %2973 = vrsqrt.f32 %v1878_v30 }
 0x36e   : > { %2808 = vmatmul.mubr.bf16.gmra.mrb[8].mxu0 %v1979_v59  ;;  %v1497_v59 = vpop.permute.xlu0 %1496  ;;  %v1584_v40 = vsel %vm1571_vm4, %v1567_v58, %v4722_v63  ;;  %v1863_v3 = vsub.f32 %v1831_v55, %v1847_v41  ;;  %v1569_v25 = vsel %vm1554_vm3, %v1552_v47, %v4703_v51 }
 0x36f   : > { %v1601_v49 = vsel %vm1588_vm5, %v1584_v40, %v1369_v17  ;;  %v1586_v36 = vsel %vm1571_vm4, %v1569_v25, %v1309_v56  ;;  %v509_v17 = vmul.f32 %v3124_v45, %v4559_v48  ;;  %2975 = vrsqrt.f32 %v1877_v5 }
 0x370   : > { %v1618_v26 = vsel %vm1605_vm6, %v1601_v49, %v1433_v33  ;;  %v1603_v50 = vsel %vm1588_vm5, %v1586_v36, %v1373_v52  ;;  %v1879_v35 = vadd.f32 1e-05, %v1863_v3  ;;  %v511_v48 = vmul.f32 %v3125_v12, %v4577_v37 }
 0x371   : > { %v4739_v22 = vpop.permute.xlu1 %1182  ;;  %v1635_v63 = vsel %vm1622_vm7, %v1618_v26, %v1497_v59  ;;  %v1620_v33 = vsel %vm1605_vm6, %v1603_v50, %v1437_v38  ;;  %v1534_v46 = vsel %vm1520_vm1, %v509_v17, %v4727_v6 }
 0x372   : > { %v1501_v1 = vpop.permute.xlu0 %1500  ;;  %v1652_v7 = vsel %vm1639_vm8, %v1635_v63, 0.0  ;;  %v1551_v56 = vsel %vm1537_vm2, %v1534_v46, %v4737_v28  ;;  %2977 = vrsqrt.f32 %v1879_v35  ;;  %v1536_v6 = vsel %vm1520_vm1, %v511_v48, %v4733_v16 }
 0x373   : > { %v1637_v51 = vsel %vm1622_vm7, %v1620_v33, %v1501_v1  ;;  %v1908_v52 = vsub.f32 %v1652_v7, %v4749_v42  ;;  %v1553_v37 = vsel %vm1537_vm2, %v1536_v6, %v4739_v22 }
 0x374   : > { %v1654_v38 = vsel %vm1639_vm8, %v1637_v51, 0.0  ;;  %v2972_v34 = vpop.eup %2971 }
 0x375   : > { %v4741_v62 = vpop.permute.xlu1 %1242  ;;  %v1924_v23 = vmul.f32 %v2972_v34, %v1908_v52 }
 0x376   : > { %v1568_v43 = vsel %vm1554_vm3, %v1551_v56, %v4741_v62  ;;  %v1910_v62 = vsub.f32 %v1654_v38, %v4763_v4 }
 0x377   : > { %v2974_v60 = vpop.eup %2973  ;;  %v1947_v4 = vmul.f32 %v4351_v32, %v1924_v23 }
 0x378   : > { %v1926_v21 = vmul.f32 %v2974_v60, %v1910_v62 }
 0x379   : > { %v4745_v11 = vpop.permute.xlu1 %1246  ;;  %v2976_v2 = vpop.eup %2975  ;;  %v1970_v20 = vadd.f32 %v4374_v39, %v1947_v4 }
 0x37a   : > { %v1570_v8 = vsel %vm1554_vm3, %v1553_v37, %v4745_v11  ;;  %v1949_v59 = vmul.f32 %v4351_v32, %v1926_v21 }
 0x37c   : > { %v2978_v54 = vpop.eup %2977 }
 0x37d   : > { %v4755_v24 = vpop.permute.xlu1 %1306 }
 0x37e   : > { %v1585_v57 = vsel %vm1571_vm4, %v1568_v43, %v4755_v24 }
 0x381   : > { %v4769_v14 = vpop.permute.xlu1 %1310 }
 0x382   : > { %v1587_v61 = vsel %vm1571_vm4, %v1570_v8, %v4769_v14 }
 0x385   : > { %v1371_v15 = vpop.permute.xlu1 %1370 }
 0x386   : > { %v1602_v28 = vsel %vm1588_vm5, %v1585_v57, %v1371_v15 }
 0x389   : > { %v1375_v0 = vpop.permute.xlu1 %1374 }
 0x38a   : > { %v1604_v53 = vsel %vm1588_vm5, %v1587_v61, %v1375_v0  ;;  %v1972_v0 = vadd.f32 %v4374_v39, %v1949_v59 }
 0x38d   : > { %v1435_v27 = vpop.permute.xlu1 %1434 }
 0x38e   : > { %v1619_v42 = vsel %vm1605_vm6, %v1602_v28, %v1435_v27 }
 0x391   : > { %v1439_v13 = vpop.permute.xlu1 %1438 }
 0x392   : > { %v1621_v15 = vsel %vm1605_vm6, %v1604_v53, %v1439_v13 }
 0x395   : > { %v1499_v29 = vpop.permute.xlu1 %1498 }
 0x396   : > { %v1636_v24 = vsel %vm1622_vm7, %v1619_v42, %v1499_v29 }
 0x397   : > { %v1653_v16 = vsel %vm1639_vm8, %v1636_v24, 0.0 }
 0x398   : > { %v1909_v22 = vsub.f32 %v1653_v16, %v4765_v9 }
 0x399   : > { %v1503_v44 = vpop.permute.xlu1 %1502 }
 0x39a   : > { %v1925_v11 = vmul.f32 %v2976_v2, %v1909_v22  ;;  %v1638_v18 = vsel %vm1622_vm7, %v1621_v15, %v1503_v44 }
 0x39b   : > { %v1655_v19 = vsel %vm1639_vm8, %v1638_v18, 0.0 }
 0x39c   : > { %v1948_v14 = vmul.f32 %v4351_v32, %v1925_v11  ;;  %v1911_v55 = vsub.f32 %v1655_v19, %v4779_v31 }
 0x39e   : > { %v1927_v9 = vmul.f32 %v2978_v54, %v1911_v55  ;;  %v1971_v58 = vadd.f32 %v4374_v39, %v1948_v14 }
 0x3a0   : > { %v1950_v41 = vmul.f32 %v4351_v32, %v1927_v9  ;;  %v1980_v40 = vpack.c.bf16 %v1971_v58, %v1970_v20 }
 0x3a2   : > { %2811 = vmatprep.mubr.bf16.mxu0 %v1980_v40  ;;  %v1973_v30 = vadd.f32 %v4374_v39, %v1950_v41 }
 0x3a4   : > { %v1981_v10 = vpack.c.bf16 %v1973_v30, %v1972_v0 }
 0x3a6   : > { %2812 = vmatmul.mubr.bf16.gmra.mrb[12].mxu0 %v1981_v10 }
 0x3c5   : > { %v2801_v49 = vpop.f32.mrb[0].mxu0 }
 0x3c6   : > { %v2699_v31 = vmul.f32 -1.442695, %v2801_v49  ;;  %v2080_v5 = vpop.f32.mrb[1].mxu0 }
 0x3c7   : > { %v2697_v3 = vmul.f32 -1.442695, %v2080_v5  ;;  %v2802_v47 = vpop.f32.mrb[2].mxu0 }
 0x3c8   : > { %2979 = vpow2.f32 %v2699_v31  ;;  %v2700_v26 = vmul.f32 -1.442695, %v2802_v47  ;;  %v2083_v25 = vpop.f32.mrb[3].mxu0 }
 0x3c9   : > { %2981 = vpow2.f32 %v2697_v3  ;;  %v2698_v63 = vmul.f32 -1.442695, %v2083_v25 }
 0x3ca   : > { %2983 = vpow2.f32 %v2700_v26 }
 0x3cb   : > { %2985 = vpow2.f32 %v2698_v63 }
 0x3d2   : > { %v2980_v32 = vpop.eup %2979 }
 0x3d3   : > { %v2982_v36 = vpop.eup %2981  ;;  %v2193_v1 = vadd.f32 1.0, %v2980_v32 }
 0x3d4   : > { %v2984_v27 = vpop.eup %2983  ;;  %v2191_v45 = vadd.f32 1.0, %v2982_v36 }
 0x3d5   : > { %v2986_v39 = vpop.eup %2985  ;;  %2987 = vrcp.f32 %v2193_v1  ;;  %v2194_v17 = vadd.f32 1.0, %v2984_v27 }
 0x3d6   : > { %2989 = vrcp.f32 %v2191_v45  ;;  %v2192_v50 = vadd.f32 1.0, %v2986_v39 }
 0x3d7   : > { %2991 = vrcp.f32 %v2194_v17 }
 0x3d8   : > { %2993 = vrcp.f32 %v2192_v50 }
 0x3df   : > { %v2988_v35 = vpop.eup %2987 }
 0x3e0   : > { %v2990_v33 = vpop.eup %2989  ;;  %v2241_v46 = vmul.f32 %v2988_v35, %v2801_v49 }
 0x3e1   : > { %v2992_v7 = vpop.eup %2991  ;;  %v2239_v13 = vmul.f32 %v2990_v33, %v2080_v5 }
 0x3e2   : > { %v2994_v51 = vpop.eup %2993  ;;  %v2242_v56 = vmul.f32 %v2992_v7, %v2802_v47 }
 0x3e3   : > { %v2240_v12 = vmul.f32 %v2994_v51, %v2083_v25  ;;  %v3164_v25 = vmov 0.0  }
 0x3e4   : > { %v2256_v48 = vpack.c.bf16 %v2242_v56, %v2241_v46  ;;  %2847 = vmatprep.subr.bf16.mxu0 %v3164_v25  ;;  %2863 = vmatprep.mubr.msk.bf16.mxu0 %vm3165_vm9, %v3164_v25 }
 0x3e5   : > { %v2255_v52 = vpack.c.bf16 %v2240_v12, %v2239_v13 }
 0x3e7   : > { %2831 = vmatprep.mubr.bf16.mxu1 %v2255_v52 }
 0x3e8   : > { %2832 = vmatmul.mubr.bf16.vlgmr.msra.gmra.mrb[0].mxu1 %v2256_v48 }
 0x405   : > { %v2805_v43 = vpop.f32.mrb[4].mxu0 }
 0x406   : > { %v2703_v38 = vmul.f32 -1.442695, %v2805_v43  ;;  %v2096_v57 = vpop.f32.mrb[5].mxu0 }
 0x407   : > { %v2701_v34 = vmul.f32 -1.442695, %v2096_v57  ;;  %v2806_v6 = vpop.f32.mrb[6].mxu0 }
 0x408   : > { %2995 = vpow2.f32 %v2703_v38  ;;  %v2704_v28 = vmul.f32 -1.442695, %v2806_v6  ;;  %v2099_v37 = vpop.f32.mrb[7].mxu0 }
 0x409   : > { %2997 = vpow2.f32 %v2701_v34  ;;  %v2702_v42 = vmul.f32 -1.442695, %v2099_v37 }
 0x40a   : > { %2999 = vpow2.f32 %v2704_v28 }
 0x40b   : > { %3001 = vpow2.f32 %v2702_v42 }
 0x412   : > { %v2996_v29 = vpop.eup %2995 }
 0x413   : > { %v2998_v23 = vpop.eup %2997  ;;  %v2197_v62 = vadd.f32 1.0, %v2996_v29 }
 0x414   : > { %v3000_v8 = vpop.eup %2999  ;;  %v2195_v24 = vadd.f32 1.0, %v2998_v23 }
 0x415   : > { %v3002_v61 = vpop.eup %3001  ;;  %3003 = vrcp.f32 %v2197_v62  ;;  %v2198_v16 = vadd.f32 1.0, %v3000_v8 }
 0x416   : > { %3005 = vrcp.f32 %v2195_v24  ;;  %v2196_v60 = vadd.f32 1.0, %v3002_v61 }
 0x417   : > { %3007 = vrcp.f32 %v2198_v16 }
 0x418   : > { %3009 = vrcp.f32 %v2196_v60 }
 0x41f   : > { %v3004_v53 = vpop.eup %3003 }
 0x420   : > { %v3006_v22 = vpop.eup %3005  ;;  %v2245_v44 = vmul.f32 %v3004_v53, %v2805_v43 }
 0x421   : > { %v3008_v2 = vpop.eup %3007  ;;  %v2243_v21 = vmul.f32 %v3006_v22, %v2096_v57 }
 0x422   : > { %v3010_v15 = vpop.eup %3009  ;;  %v2246_v4 = vmul.f32 %v3008_v2, %v2806_v6 }
 0x423   : > { %v2244_v11 = vmul.f32 %v3010_v15, %v2099_v37 }
 0x424   : > { %v2258_v18 = vpack.c.bf16 %v2246_v4, %v2245_v44 }
 0x425   : > { %v2257_v19 = vpack.c.bf16 %v2244_v11, %v2243_v21 }
 0x427   : > { %2835 = vmatprep.mubr.bf16.mxu1 %v2257_v19 }
 0x428   : > { %2836 = vmatmul.mubr.bf16.gmra.mrb[4].mxu1 %v2258_v18 }
 0x441   : > { %v2809_v14 = vpop.f32.mrb[8].mxu0 }
 0x442   : > { %v2707_v55 = vmul.f32 -1.442695, %v2809_v14  ;;  %v2112_v54 = vpop.f32.mrb[9].mxu0 }
 0x443   : > { %v2705_v59 = vmul.f32 -1.442695, %v2112_v54  ;;  %v2810_v9 = vpop.f32.mrb[10].mxu0 }
 0x444   : > { %3011 = vpow2.f32 %v2707_v55  ;;  %v2708_v20 = vmul.f32 -1.442695, %v2810_v9  ;;  %v2115_v58 = vpop.f32.mrb[11].mxu0 }
 0x445   : > { %3013 = vpow2.f32 %v2705_v59  ;;  %v2706_v41 = vmul.f32 -1.442695, %v2115_v58 }
 0x446   : > { %3015 = vpow2.f32 %v2708_v20 }
 0x447   : > { %3017 = vpow2.f32 %v2706_v41 }
 0x44e   : > { %v3012_v40 = vpop.eup %3011 }
 0x44f   : > { %v3014_v0 = vpop.eup %3013  ;;  %v2201_v30 = vadd.f32 1.0, %v3012_v40 }
 0x450   : > { %v3016_v10 = vpop.eup %3015  ;;  %v2199_v49 = vadd.f32 1.0, %v3014_v0 }
 0x451   : > { %v3018_v31 = vpop.eup %3017  ;;  %3019 = vrcp.f32 %v2201_v30  ;;  %v2202_v5 = vadd.f32 1.0, %v3016_v10 }
 0x452   : > { %3021 = vrcp.f32 %v2199_v49  ;;  %v2200_v3 = vadd.f32 1.0, %v3018_v31 }
 0x453   : > { %3023 = vrcp.f32 %v2202_v5 }
 0x454   : > { %3025 = vrcp.f32 %v2200_v3 }
 0x45b   : > { %v3020_v47 = vpop.eup %3019 }
 0x45c   : > { %v3022_v26 = vpop.eup %3021  ;;  %v2249_v36 = vmul.f32 %v3020_v47, %v2809_v14 }
 0x45d   : > { %v3024_v63 = vpop.eup %3023  ;;  %v2247_v27 = vmul.f32 %v3022_v26, %v2112_v54 }
 0x45e   : > { %v3026_v32 = vpop.eup %3025  ;;  %v2250_v1 = vmul.f32 %v3024_v63, %v2810_v9 }
 0x45f   : > { %v2248_v45 = vmul.f32 %v3026_v32, %v2115_v58 }
 0x460   : > { %v2260_v39 = vpack.c.bf16 %v2250_v1, %v2249_v36 }
 0x461   : > { %v2259_v17 = vpack.c.bf16 %v2248_v45, %v2247_v27 }
 0x463   : > { %2839 = vmatprep.mubr.bf16.mxu1 %v2259_v17 }
 0x464   : > { %2840 = vmatmul.mubr.bf16.gmra.mrb[8].mxu1 %v2260_v39 }
 0x479   : > { %v2813_v50 = vpop.f32.mrb[12].mxu0 }
 0x47a   : > { %v2711_v35 = vmul.f32 -1.442695, %v2813_v50  ;;  %v2128_v33 = vpop.f32.mrb[13].mxu0 }
 0x47b   : > { %v2709_v7 = vmul.f32 -1.442695, %v2128_v33  ;;  %v2814_v51 = vpop.f32.mrb[14].mxu0 }
 0x47c   : > { %3027 = vpow2.f32 %v2711_v35  ;;  %v2712_v46 = vmul.f32 -1.442695, %v2814_v51  ;;  %v2131_v56 = vpop.f32.mrb[15].mxu0 }
 0x47d   : > { %3029 = vpow2.f32 %v2709_v7  ;;  %v2710_v13 = vmul.f32 -1.442695, %v2131_v56 }
 0x47e   : > { %3031 = vpow2.f32 %v2712_v46 }
 0x47f   : > { %3033 = vpow2.f32 %v2710_v13 }
 0x486   : > { %v3028_v12 = vpop.eup %3027 }
 0x487   : > { %v3030_v48 = vpop.eup %3029  ;;  %v2205_v52 = vadd.f32 1.0, %v3028_v12 }
 0x488   : > { %v3032_v43 = vpop.eup %3031  ;;  %v2203_v38 = vadd.f32 1.0, %v3030_v48 }
 0x489   : > { %v3034_v57 = vpop.eup %3033  ;;  %3035 = vrcp.f32 %v2205_v52  ;;  %v2206_v34 = vadd.f32 1.0, %v3032_v43 }
 0x48a   : > { %3037 = vrcp.f32 %v2203_v38  ;;  %v2204_v6 = vadd.f32 1.0, %v3034_v57 }
 0x48b   : > { %3039 = vrcp.f32 %v2206_v34 }
 0x48c   : > { %3041 = vrcp.f32 %v2204_v6 }
 0x493   : > { %v3036_v28 = vpop.eup %3035 }
 0x494   : > { %v3038_v37 = vpop.eup %3037  ;;  %v2253_v23 = vmul.f32 %v3036_v28, %v2813_v50 }
 0x495   : > { %v3040_v42 = vpop.eup %3039  ;;  %v2251_v8 = vmul.f32 %v3038_v37, %v2128_v33 }
 0x496   : > { %v3042_v29 = vpop.eup %3041  ;;  %v2254_v62 = vmul.f32 %v3040_v42, %v2814_v51 }
 0x497   : > { %v2252_v24 = vmul.f32 %v3042_v29, %v2131_v56 }
 0x498   : > { %v2262_v61 = vpack.c.bf16 %v2254_v62, %v2253_v23 }
 0x499   : > { %v2261_v16 = vpack.c.bf16 %v2252_v24, %v2251_v8 }
 0x49b   : > { %2843 = vmatprep.mubr.bf16.mxu1 %v2261_v16 }
 0x49c   : > { %2844 = vmatmul.mubr.bf16.gmra.mrb[12].mxu1 %v2262_v61 }
 0x4bb   : > { %v2833_v60 = vpop.f32.mrb[0].mxu1 }
 0x4bc   : > { %v2723_v53 = vmul.f32 -1.442695, %v2833_v60  ;;  %v2361_v22 = vpop.f32.mrb[1].mxu1 }
 0x4bd   : > { %v2721_v2 = vmul.f32 -1.442695, %v2361_v22  ;;  %v2834_v15 = vpop.f32.mrb[2].mxu1 }
 0x4be   : > { %3043 = vpow2.f32 %v2723_v53  ;;  %v2724_v44 = vmul.f32 -1.442695, %v2834_v15  ;;  %v2364_v4 = vpop.f32.mrb[3].mxu1 }
 0x4bf   : > { %3045 = vpow2.f32 %v2721_v2  ;;  %v2722_v21 = vmul.f32 -1.442695, %v2364_v4 }
 0x4c0   : > { %3047 = vpow2.f32 %v2724_v44 }
 0x4c1   : > { %3049 = vpow2.f32 %v2722_v21 }
 0x4c8   : > { %v3044_v11 = vpop.eup %3043 }
 0x4c9   : > { %v3046_v18 = vpop.eup %3045  ;;  %v2474_v19 = vadd.f32 1.0, %v3044_v11 }
 0x4ca   : > { %v3048_v14 = vpop.eup %3047  ;;  %v2472_v55 = vadd.f32 1.0, %v3046_v18 }
 0x4cb   : > { %v3050_v54 = vpop.eup %3049  ;;  %3051 = vrcp.f32 %v2474_v19  ;;  %v2475_v59 = vadd.f32 1.0, %v3048_v14 }
 0x4cc   : > { %3053 = vrcp.f32 %v2472_v55  ;;  %v2473_v9 = vadd.f32 1.0, %v3050_v54 }
 0x4cd   : > { %3055 = vrcp.f32 %v2475_v59 }
 0x4ce   : > { %3057 = vrcp.f32 %v2473_v9 }
 0x4d5   : > { %v3052_v20 = vpop.eup %3051 }
 0x4d6   : > { %v3054_v58 = vpop.eup %3053  ;;  %v2522_v0 = vmul.f32 %v3052_v20, %v2833_v60 }
 0x4d7   : > { %v3056_v41 = vpop.eup %3055  ;;  %v2520_v10 = vmul.f32 %v3054_v58, %v2361_v22 }
 0x4d8   : > { %v3058_v40 = vpop.eup %3057  ;;  %v2523_v30 = vmul.f32 %v3056_v41, %v2834_v15 }
 0x4d9   : > { %v2521_v49 = vmul.f32 %v3058_v40, %v2364_v4 }
 0x4da   : > { %v2539_v31 = vpack.c.bf16 %v2523_v30, %v2522_v0 }
 0x4db   : > { %v2538_v5 = vpack.c.bf16 %v2521_v49, %v2520_v10 }
 0x4dd   : > { %2848 = vmatpush3.bf16.msra.mxu0 %v2538_v5 }
 0x4de   : > { %2849 = vmatprep.subr.bf16.mxu0 %v3164_v25 }
 0x4e1   : > { %2850 = vmatpush3.bf16.msra.mxu0 %v2539_v31 }
 0x4e2   : > { %2851 = vmatprep.subr.bf16.mxu0 %v3164_v25 }
 0x4fb   : > { %v2837_v3 = vpop.f32.mrb[4].mxu1 }
 0x4fc   : > { %v2727_v47 = vmul.f32 -1.442695, %v2837_v3  ;;  %v2377_v26 = vpop.f32.mrb[5].mxu1 }
 0x4fd   : > { %v2725_v63 = vmul.f32 -1.442695, %v2377_v26  ;;  %v2838_v32 = vpop.f32.mrb[6].mxu1 }
 0x4fe   : > { %3059 = vpow2.f32 %v2727_v47  ;;  %v2728_v36 = vmul.f32 -1.442695, %v2838_v32  ;;  %v2380_v1 = vpop.f32.mrb[7].mxu1 }
 0x4ff   : > { %3061 = vpow2.f32 %v2725_v63  ;;  %v2726_v27 = vmul.f32 -1.442695, %v2380_v1 }
 0x500   : > { %3063 = vpow2.f32 %v2728_v36 }
 0x501   : > { %3065 = vpow2.f32 %v2726_v27 }
 0x508   : > { %v3060_v45 = vpop.eup %3059 }
 0x509   : > { %v3062_v39 = vpop.eup %3061  ;;  %v2478_v17 = vadd.f32 1.0, %v3060_v45 }
 0x50a   : > { %v3064_v50 = vpop.eup %3063  ;;  %v2476_v35 = vadd.f32 1.0, %v3062_v39 }
 0x50b   : > { %v3066_v33 = vpop.eup %3065  ;;  %3067 = vrcp.f32 %v2478_v17  ;;  %v2479_v7 = vadd.f32 1.0, %v3064_v50 }
 0x50c   : > { %3069 = vrcp.f32 %v2476_v35  ;;  %v2477_v51 = vadd.f32 1.0, %v3066_v33 }
 0x50d   : > { %3071 = vrcp.f32 %v2479_v7 }
 0x50e   : > { %3073 = vrcp.f32 %v2477_v51  ;;  %v2536_v51 = vld [vmem:[%s3230_s23] sm:$0x3] }
 0x515   : > { %v3068_v46 = vpop.eup %3067 }
 0x516   : > { %v3070_v56 = vpop.eup %3069  ;;  %v2526_v48 = vmul.f32 %v3068_v46, %v2837_v3  ;;  %v2537_v46 = vpack.c.bf16 %v2536_v51, %v2536_v51 }
 0x517   : > { %v3072_v13 = vpop.eup %3071  ;;  %v2524_v43 = vmul.f32 %v3070_v56, %v2377_v26  ;;  %v2737_v56 = vld [vmem:[%s390_s16] ss:$0 sm:$0xff] }
 0x518   : > { %v3074_v12 = vpop.eup %3073  ;;  %v2527_v52 = vmul.f32 %v3072_v13, %v2838_v32 }
 0x519   : > { %v2525_v38 = vmul.f32 %v3074_v12, %v2380_v1 }
 0x51a   : > { %v2541_v57 = vpack.c.bf16 %v2527_v52, %v2526_v48 }
 0x51b   : > { %v2540_v34 = vpack.c.bf16 %v2525_v38, %v2524_v43 }
 0x51d   : > { %2852 = vmatpush3.bf16.msra.mxu0 %v2540_v34 }
 0x51e   : > { %2853 = vmatprep.subr.bf16.mxu0 %v3164_v25 }
 0x521   : > { %2854 = vmatpush3.bf16.msra.mxu0 %v2541_v57 }
 0x522   : > { %2855 = vmatprep.subr.bf16.mxu0 %v3164_v25 }
 0x537   : > { %v2841_v6 = vpop.f32.mrb[8].mxu1 }
 0x538   : > { %v2731_v28 = vmul.f32 -1.442695, %v2841_v6  ;;  %v2393_v37 = vpop.f32.mrb[9].mxu1 }
 0x539   : > { %v2729_v42 = vmul.f32 -1.442695, %v2393_v37  ;;  %v2842_v29 = vpop.f32.mrb[10].mxu1 }
 0x53a   : > { %3075 = vpow2.f32 %v2731_v28  ;;  %v2732_v23 = vmul.f32 -1.442695, %v2842_v29  ;;  %v2396_v62 = vpop.f32.mrb[11].mxu1 }
 0x53b   : > { %3077 = vpow2.f32 %v2729_v42  ;;  %v2730_v8 = vmul.f32 -1.442695, %v2396_v62 }
 0x53c   : > { %3079 = vpow2.f32 %v2732_v23 }
 0x53d   : > { %3081 = vpow2.f32 %v2730_v8 }
 0x544   : > { %v3076_v24 = vpop.eup %3075 }
 0x545   : > { %v3078_v61 = vpop.eup %3077  ;;  %v2482_v16 = vadd.f32 1.0, %v3076_v24 }
 0x546   : > { %v3080_v60 = vpop.eup %3079  ;;  %v2480_v53 = vadd.f32 1.0, %v3078_v61 }
 0x547   : > { %v3082_v22 = vpop.eup %3081  ;;  %3083 = vrcp.f32 %v2482_v16  ;;  %v2483_v2 = vadd.f32 1.0, %v3080_v60 }
 0x548   : > { %3085 = vrcp.f32 %v2480_v53  ;;  %v2481_v15 = vadd.f32 1.0, %v3082_v22 }
 0x549   : > { %3087 = vrcp.f32 %v2483_v2 }
 0x54a   : > { %3089 = vrcp.f32 %v2481_v15 }
 0x551   : > { %v3084_v44 = vpop.eup %3083 }
 0x552   : > { %v3086_v4 = vpop.eup %3085  ;;  %v2530_v18 = vmul.f32 %v3084_v44, %v2841_v6 }
 0x553   : > { %v3088_v21 = vpop.eup %3087  ;;  %v2528_v14 = vmul.f32 %v3086_v4, %v2393_v37 }
 0x554   : > { %v3090_v11 = vpop.eup %3089  ;;  %v2531_v19 = vmul.f32 %v3088_v21, %v2842_v29 }
 0x555   : > { %v2529_v55 = vmul.f32 %v3090_v11, %v2396_v62 }
 0x556   : > { %v2543_v54 = vpack.c.bf16 %v2531_v19, %v2530_v18 }
 0x557   : > { %v2542_v59 = vpack.c.bf16 %v2529_v55, %v2528_v14 }
 0x559   : > { %2856 = vmatpush3.bf16.msra.mxu0 %v2542_v59 }
 0x55a   : > { %2857 = vmatprep.subr.bf16.mxu0 %v3164_v25 }
 0x55d   : > { %2858 = vmatpush3.bf16.msra.mxu0 %v2543_v54 }
 0x55e   : > { %2859 = vmatprep.subr.bf16.mxu0 %v3164_v25 }
 0x56f   : > { %v2845_v9 = vpop.f32.mrb[12].mxu1 }
 0x570   : > { %v2735_v20 = vmul.f32 -1.442695, %v2845_v9  ;;  %v2409_v58 = vpop.f32.mrb[13].mxu1 }
 0x571   : > { %v2733_v41 = vmul.f32 -1.442695, %v2409_v58  ;;  %v2846_v40 = vpop.f32.mrb[14].mxu1 }
 0x572   : > { %3091 = vpow2.f32 %v2735_v20  ;;  %v2736_v0 = vmul.f32 -1.442695, %v2846_v40  ;;  %v2412_v30 = vpop.f32.mrb[15].mxu1 }
 0x573   : > { %3093 = vpow2.f32 %v2733_v41  ;;  %v2734_v10 = vmul.f32 -1.442695, %v2412_v30 }
 0x574   : > { %3095 = vpow2.f32 %v2736_v0 }
 0x575   : > { %3097 = vpow2.f32 %v2734_v10 }
 0x57c   : > { %v3092_v49 = vpop.eup %3091 }
 0x57d   : > { %v3094_v31 = vpop.eup %3093  ;;  %v2486_v5 = vadd.f32 1.0, %v3092_v49 }
 0x57e   : > { %v3096_v3 = vpop.eup %3095  ;;  %v2484_v47 = vadd.f32 1.0, %v3094_v31 }
 0x57f   : > { %v3098_v26 = vpop.eup %3097  ;;  %3099 = vrcp.f32 %v2486_v5  ;;  %v2487_v63 = vadd.f32 1.0, %v3096_v3 }
 0x580   : > { %3101 = vrcp.f32 %v2484_v47  ;;  %v2485_v32 = vadd.f32 1.0, %v3098_v26 }
 0x581   : > { %3103 = vrcp.f32 %v2487_v63 }
 0x582   : > { %3105 = vrcp.f32 %v2485_v32 }
 0x589   : > { %v3100_v36 = vpop.eup %3099 }
 0x58a   : > { %v3102_v1 = vpop.eup %3101  ;;  %v2534_v39 = vmul.f32 %v3100_v36, %v2845_v9 }
 0x58b   : > { %v3104_v27 = vpop.eup %3103  ;;  %v2532_v50 = vmul.f32 %v3102_v1, %v2409_v58 }
 0x58c   : > { %v3106_v45 = vpop.eup %3105  ;;  %v2535_v17 = vmul.f32 %v3104_v27, %v2846_v40 }
 0x58d   : > { %v2533_v35 = vmul.f32 %v3106_v45, %v2412_v30 }
 0x58e   : > { %v2545_v33 = vpack.c.bf16 %v2535_v17, %v2534_v39 }
 0x58f   : > { %v2544_v7 = vpack.c.bf16 %v2533_v35, %v2532_v50 }
 0x591   : > { %2860 = vmatpush3.bf16.msra.mxu0 %v2544_v7 }
 0x592   : > { %2861 = vmatprep.subr.bf16.mxu0 %v3164_v25  ;;  %v2586_v25 = vld [vmem:[%s4881_s9] sm:$0x3] }
 0x595   : > { %2862 = vmatpush3.bf16.msra.mxu0 %v2545_v33 }
 0x598   : > { %2864 = vmatmul.mubr.bf16.vlgmr.msra.gmra.mrb[16].mxu0 %v2537_v46 }
 0x66b   : > { %v2580_v13 = vpop.f32.mrb[16].mxu0 }
 0x66c   : > { %v2594_v12 = vmul.f32 %v2737_v56, %v2580_v13  ;;  %v2865_v48 = vpop.f32.mrb[17].mxu0 }
 0x66d   : > { %v2583_v52 = vpop.f32.mrb[18].mxu0 }
 0x66e   : > { %v2866_v43 = vpop.f32.mrb[19].mxu0  ;;  %v2596_v38 = vsel %vm2595_vm10, %v2594_v12, 0.0 }
 0x66f   : > { %2597 = vadd.xlane.f32.xlu0 %v2596_v38 }
 0x6fc   : > { %v2598_v57 = vpop.xlane.xlu0 %2597 }
 0x6fd   : > { %v2599_v34 = vadd.f32 %v2598_v57, %v2586_v25 }
 0x6ff   : > { %2601 = vst.msk [vmem:[%s4881_s9] sm:$0x3] %vm2600_vm11, %v2599_v34 }
 0x700 PF: > { %s25_s14 = sadd.s32 1, %s3146_s14  }
 0x701   : > { %p22_p0 = scmp.ge.s32.totalorder %s25_s14, 4  }
 0x703   :  { %24 = sbr.rel (!%p22_p0) target bundleno = 16 (0x10), region = 94 }

</bundles_post_ra>
